<compile_context>
chip_gen: v5e
topology: v5e:2x2
jax: 0.10.0
libtpu: 0.0.40
codegen_flags: <defaults>
</compile_context>

<pallas_src>
import jax
import jax.numpy as jnp
from jax.experimental import pallas as pl
from jax.experimental.pallas import tpu as pltpu

_LANE = 128
_DEFAULT_TM = 512  # lane-tile size; fits easily in VMEM on v5e/v6e/v7x


def _round_up(x, m):
    return ((x + m - 1) // m) * m


# ---------------------------------------------------------------------------
# In-kernel helpers
# ---------------------------------------------------------------------------
def _apply_act(x, act):
    if act == "relu":
        return jnp.maximum(x, 0.0)
    if act == "leakyrelu":
        return jnp.where(x >= 0, x, 0.01 * x)  # nn.LeakyReLU default slope
    if act == "tanh":
        return jnp.tanh(x)
    if act == "gelu":
        # tanh approximation -> EUP slot (otherwise idle in this kernel)
        return jax.nn.gelu(x, approximate=True)
    if act == "none":
        return x
    # TODO(synk): 'prelu' carries a learned slope parameter; not wired through here.
    raise ValueError(f"unsupported activation: {act}")


def _make_conv_kernel(*, K, TM, L_out, halo, emit_stats, act, has_res):
    """Fused conv1d tile kernel.

    halo=True  : inputs are (xa, xb) = input blocks j and j+1; the K taps are
                 gathered in-kernel (stride 1 only) -> single (KC, TM) matmul.
    halo=False : input is a pre-gathered (KC, TM) taps block.
    emit_stats : write per-tile masked (sum, sumsq) partials for BatchNorm.
    """

    def kernel(*refs):
        if halo:
            xa_ref, xb_ref = refs[0], refs[1]
            idx = 2
        else:
            taps_ref = refs[0]
            idx = 1
        w_ref = refs[idx]
        b_ref = refs[idx + 1]
        idx += 2
        res_ref = None
        if has_res:
            res_ref = refs[idx]
            idx += 1
        out_ref = refs[idx]
        stats_ref = refs[idx + 1] if emit_stats else None

        if halo:
            xa = xa_ref[0]                         # (C_in, TM)
            halo_cols = xb_ref[0][:, : K - 1]      # (C_in, K-1)
            win = jnp.concatenate([xa, halo_cols], axis=1)          # (C_in, TM+K-1)
            taps = jnp.concatenate(
                [win[:, k : k + TM] for k in range(K)], axis=0)     # (K*C_in, TM)
        else:
            taps = taps_ref[0]                     # (K*C_in, TM)

        # Single lane-dense MXU matmul: (C_out, KC) @ (KC, TM) -> (C_out, TM)
        acc = jnp.dot(w_ref[...], taps, preferred_element_type=jnp.float32)
        acc = acc + b_ref[...]                     # (C_out, 1) broadcast over lanes

        if emit_stats:
            # Per-tile BN partials; mask out padded output columns (>= L_out).
            col = (jax.lax.broadcasted_iota(jnp.int32, (1, TM), 1)
                   + pl.program_id(1) * TM)
            masked = jnp.where(col < L_out, acc, 0.0)
            s = jnp.sum(masked, axis=1, keepdims=True)               # (C_out, 1)
            ss = jnp.sum(masked * masked, axis=1, keepdims=True)     # (C_out, 1)
            stats_ref[...] = jnp.concatenate([s, ss], axis=1)[None]  # (1, C_out, 2)
        else:
            acc = _apply_act(acc, act)
            if has_res:
                acc = acc + res_ref[0].astype(jnp.float32)

        out_ref[...] = acc[None].astype(out_ref.dtype)

    return kernel


def _make_affine_act_kernel(*, act, has_res):
    """Pass 2: y * scale + shift (folded BN) -> activation -> (+ residual)."""

    def kernel(*refs):
        if has_res:
            y_ref, scale_ref, shift_ref, res_ref, out_ref = refs
        else:
            y_ref, scale_ref, shift_ref, out_ref = refs
            res_ref = None
        v = y_ref[0].astype(jnp.float32) * scale_ref[...] + shift_ref[...]
        v = _apply_act(v, act)
        if has_res:
            v = v + res_ref[0].astype(jnp.float32)
        out_ref[...] = v[None].astype(out_ref.dtype)

    return kernel


# ---------------------------------------------------------------------------
# One Conv1d [+ BatchNorm1d] [+ act] [+ residual] stage
# ---------------------------------------------------------------------------
def conv_bn_act_layer(x, w, b, *, stride=1, padding=0, act="leakyrelu",
                      use_bn=False, gamma=None, beta=None, residual=None,
                      eps=1e-5, dtype=jnp.float32):
    """x: (N, C_in, L)  NCL.  w: (C_out, C_in, K)  (PyTorch Conv1d layout)."""
    N, C_in, L = x.shape
    C_out, C_in_w, K = w.shape
    assert C_in == C_in_w
    L_out = (L + 2 * padding - K) // stride + 1
    assert L_out >= 1
    if residual is not None:
        assert residual.shape == (N, C_out, L_out)

    TM = min(_DEFAULT_TM, _round_up(L_out, _LANE))   # lane tile (multiple of 128)
    n_j = (L_out + TM - 1) // TM
    Lp_out = n_j * TM
    KC = K * C_in
    has_res = residual is not None

    x = x.astype(dtype)
    # weight columns ordered (k-major, c-minor) to match the in-kernel tap gather
    w2 = jnp.transpose(w, (0, 2, 1)).reshape(C_out, KC).astype(dtype)
    b2 = b.reshape(C_out, 1).astype(jnp.float32)

    halo = (stride == 1 and K > 1)
    if halo:
        # Pad once; each grid step reads its own tile plus the next tile (halo).
        TIN = TM
        Lp_in = (n_j + 1) * TIN
        x_p = jnp.pad(x, ((0, 0), (0, 0), (padding, Lp_in - L - padding)))
        conv_args = [x_p, x_p]
        conv_specs = [
            pl.BlockSpec((1, C_in, TIN), lambda n, j: (n, 0, j)),
            pl.BlockSpec((1, C_in, TIN), lambda n, j: (n, 0, j + 1)),
        ]
    else:
        # TODO(synk): stride > 1 (or K == 1) falls back to materializing the K
        # shifted tap copies in HBM; a halo formulation for strided conv is not wired.
        x_p = jnp.pad(x, ((0, 0), (0, 0), (padding, padding)))
        taps = jnp.concatenate(
            [x_p[:, :, k : k + stride * (L_out - 1) + 1 : stride] for k in range(K)],
            axis=1)
        taps = jnp.pad(taps, ((0, 0), (0, 0), (0, Lp_out - L_out)))
        conv_args = [taps]
        conv_specs = [pl.BlockSpec((1, KC, TM), lambda n, j: (n, 0, j))]

    w_spec = pl.BlockSpec((C_out, KC), lambda n, j: (0, 0))
    vec_spec = pl.BlockSpec((C_out, 1), lambda n, j: (0, 0))
    tile_spec = pl.BlockSpec((1, C_out, TM), lambda n, j: (n, 0, j))

    cparams = pltpu.CompilerParams(
        dimension_semantics=("parallel", "parallel"),
        vmem_limit_bytes=32 * 1024 * 1024,
    )

    res_p = None
    if has_res:
        res_p = jnp.pad(residual.astype(dtype), ((0, 0), (0, 0), (0, Lp_out - L_out)))

    if use_bn:
        # ---- pass 1: conv + bias, per-tile masked (sum, sumsq) partials ----
        y, stats = pl.pallas_call(
            _make_conv_kernel(K=K, TM=TM, L_out=L_out, halo=halo,
                              emit_stats=True, act="none", has_res=False),
            grid=(N, n_j),
            in_specs=conv_specs + [w_spec, vec_spec],
            out_specs=(tile_spec,
                       pl.BlockSpec((1, C_out, 2), lambda n, j: (n * n_j + j, 0, 0))),
            out_shape=(jax.ShapeDtypeStruct((N, C_out, Lp_out), dtype),
                       jax.ShapeDtypeStruct((N * n_j, C_out, 2), jnp.float32)),
            compiler_params=cparams,
        )(*conv_args, w2, b2)

        # ---- tiny cross-tile reduction + fold BN into a single scale/shift ----
        cnt = float(N * L_out)
        sums = jnp.sum(stats, axis=0)                       # (C_out, 2)
        mean = sums[:, 0] / cnt
        var = jnp.maximum(sums[:, 1] / cnt - mean * mean, 0.0)   # biased, matches BN
        inv_std = jax.lax.rsqrt(var + eps)
        g = (jnp.ones((C_out,), jnp.float32) if gamma is None else gamma).astype(jnp.float32)
        bt = (jnp.zeros((C_out,), jnp.float32) if beta is None else beta).astype(jnp.float32)
        scale = (g * inv_std).reshape(C_out, 1)
        shift = (bt - mean * g * inv_std).reshape(C_out, 1)
        # TODO(synk): running_mean / running_var buffers are not updated
        # (train-mode batch-stat forward only; no eval-mode path).

        # ---- pass 2: affine + activation (+ residual) ----
        args2 = [y, scale, shift]
        specs2 = [tile_spec, vec_spec, vec_spec]
        if has_res:
            args2.append(res_p)
            specs2.append(tile_spec)
        out = pl.pallas_call(
            _make_affine_act_kernel(act=act, has_res=has_res),
            grid=(N, n_j),
            in_specs=specs2,
            out_specs=tile_spec,
            out_shape=jax.ShapeDtypeStruct((N, C_out, Lp_out), dtype),
            compiler_params=cparams,
        )(*args2)
    else:
        # ---- single fused pass: conv + bias + activation (+ residual) ----
        args = conv_args + [w2, b2]
        specs = conv_specs + [w_spec, vec_spec]
        if has_res:
            args.append(res_p)
            specs.append(tile_spec)
        out = pl.pallas_call(
            _make_conv_kernel(K=K, TM=TM, L_out=L_out, halo=halo,
                              emit_stats=False, act=act, has_res=has_res),
            grid=(N, n_j),
            in_specs=specs,
            out_specs=tile_spec,
            out_shape=jax.ShapeDtypeStruct((N, C_out, Lp_out), dtype),
            compiler_params=cparams,
        )(*args)

    return out[:, :, :L_out]


# ---------------------------------------------------------------------------
# Encoder forward (keeps NCL / lane-dense layout end-to-end)
# ---------------------------------------------------------------------------
def conv1d_encoder_forward(params, x_ncl, *, stride, padding, res_padding,
                           act="leakyrelu", use_bn=False, use_proj=False,
                           dtype=jnp.float32, eps=1e-5):
    x = x_ncl.astype(dtype)                      # (N, C, L) == PyTorch NCL
    for layer in params["convs"]:
        x = conv_bn_act_layer(
            x, layer["conv"]["w"], layer["conv"]["b"],
            stride=stride, padding=padding, act=act, use_bn=use_bn,
            gamma=layer.get("gamma"), beta=layer.get("beta"),
            eps=eps, dtype=dtype)
    for rb in params["res_blocks"]:
        h = conv_bn_act_layer(
            x, rb["conv1"]["w"], rb["conv1"]["b"],
            stride=1, padding=res_padding, act=act, use_bn=True,
            gamma=rb["gamma1"], beta=rb["beta1"], eps=eps, dtype=dtype)
        x = conv_bn_act_layer(
            h, rb["conv2"]["w"], rb["conv2"]["b"],
            stride=1, padding=0, act=act, use_bn=True,
            gamma=rb["gamma2"], beta=rb["beta2"],
            residual=x, eps=eps, dtype=dtype)
    if use_proj and params["proj"] is not None:
        x = conv_bn_act_layer(
            x, params["proj"]["w"], params["proj"]["b"],
            stride=1, padding=0, act="none", use_bn=False, dtype=dtype)
    return x


encoder_forward = jax.jit(
    conv1d_encoder_forward,
    static_argnames=("stride", "padding", "res_padding", "act",
                     "use_bn", "use_proj", "dtype", "eps"),
)


# ---------------------------------------------------------------------------
# Parameter init (mirrors nn.Conv1d / nn.BatchNorm1d defaults, deterministic)
# ---------------------------------------------------------------------------
def _init_conv(key, c_in, c_out, k):
    kw, kb = jax.random.split(key)
    bound = 1.0 / float(c_in * k) ** 0.5
    w = jax.random.uniform(kw, (c_out, c_in, k), jnp.float32, -bound, bound)
    b = jax.random.uniform(kb, (c_out,), jnp.float32, -bound, bound)
    return {"w": w, "b": b}


def init_encoder(key, channels, kernels, n_res_block, n_res_channel, res_kernels,
                 use_bn=False, use_proj=False):
    params = {"convs": [], "res_blocks": [], "proj": None}
    prev = channels[0]
    block_channels = channels[1:-1] if use_proj else channels[1:]
    kidx = 0
    for chn in block_channels:
        key, sub = jax.random.split(key)
        layer = {"conv": _init_conv(sub, prev, chn, kernels[kidx])}
        if use_bn:
            layer["gamma"] = jnp.ones((chn,), jnp.float32)
            layer["beta"] = jnp.zeros((chn,), jnp.float32)
        params["convs"].append(layer)
        kidx += 1
        prev = chn
    for _ in range(n_res_block):
        key, s1, s2 = jax.random.split(key, 3)
        params["res_blocks"].append({
            "conv1": _init_conv(s1, prev, n_res_channel, res_kernels[0]),
            "gamma1": jnp.ones((n_res_channel,), jnp.float32),
            "beta1": jnp.zeros((n_res_channel,), jnp.float32),
            "conv2": _init_conv(s2, n_res_channel, prev, res_kernels[1]),
            "gamma2": jnp.ones((prev,), jnp.float32),
            "beta2": jnp.zeros((prev,), jnp.float32),
        })
    if use_proj:
        key, sub = jax.random.split(key)
        params["proj"] = _init_conv(sub, prev, channels[-1], 1)
    return params


# ---------------------------------------------------------------------------
# Pure-JAX reference (XLA conv) for numerical verification
# ---------------------------------------------------------------------------
def _ref_conv(x_ncl, w, b, stride, padding):
    y = jax.lax.conv_general_dilated(
        x_ncl, w, window_strides=(stride,), padding=[(padding, padding)],
        dimension_numbers=("NCH", "OIH", "NCH"))
    return y + b[None, :, None]


def _ref_bn(y, gamma, beta, eps=1e-5):
    mean = jnp.mean(y, axis=(0, 2), keepdims=True)
    var = jnp.mean((y - mean) ** 2, axis=(0, 2), keepdims=True)
    return ((y - mean) * jax.lax.rsqrt(var + eps) * gamma[None, :, None]
            + beta[None, :, None])


def _ref_act(y, act):
    if act == "relu":
        return jnp.maximum(y, 0.0)
    if act == "leakyrelu":
        return jnp.where(y >= 0, y, 0.01 * y)
    if act == "tanh":
        return jnp.tanh(y)
    if act == "gelu":
        return jax.nn.gelu(y, approximate=True)
    if act == "none":
        return y
    raise ValueError(act)


def ref_forward(params, x_ncl, *, stride, padding, res_padding, act="leakyrelu",
                use_bn=False, use_proj=False):
    x = x_ncl
    for layer in params["convs"]:
        x = _ref_conv(x, layer["conv"]["w"], layer["conv"]["b"], stride, padding)
        if use_bn:
            x = _ref_bn(x, layer["gamma"], layer["beta"])
        x = _ref_act(x, act)
    for rb in params["res_blocks"]:
        h = _ref_act(_ref_bn(_ref_conv(x, rb["conv1"]["w"], rb["conv1"]["b"],
                                       1, res_padding),
                             rb["gamma1"], rb["beta1"]), act)
        h = _ref_act(_ref_bn(_ref_conv(h, rb["conv2"]["w"], rb["conv2"]["b"], 1, 0),
                             rb["gamma2"], rb["beta2"]), act)
        x = h + x
    if use_proj and params["proj"] is not None:
        x = _ref_conv(x, params["proj"]["w"], params["proj"]["b"], 1, 0)
    return x


def _max_abs_err(a, b):
    return float(jnp.max(jnp.abs(a.astype(jnp.float32) - b.astype(jnp.float32))))


# ---------------------------------------------------------------------------
if __name__ == "__main__":
    key = jax.random.PRNGKey(0)
    key, kp1, kx1, kp2, kx2 = jax.random.split(key, 5)

    # ---- Case 1: toy config (no BN, no proj), f32, strict check --------------
    cfg1 = dict(stride=1, padding=1, res_padding=1, act="leakyrelu",
                use_bn=False, use_proj=False)
    channels1 = [4, 8, 16]
    params1 = init_encoder(kp1, channels1, [3, 3], 1, 8, [3, 1],
                           use_bn=cfg1["use_bn"], use_proj=cfg1["use_proj"])
    x1 = jax.random.normal(kx1, (2, channels1[0], 16), jnp.float32)  # NCL
    out1 = jax.block_until_ready(encoder_forward(params1, x1, dtype=jnp.float32, **cfg1))
    ref1 = jax.block_until_ready(ref_forward(params1, x1, **cfg1))
    assert out1.shape == ref1.shape, (out1.shape, ref1.shape)
    err1 = _max_abs_err(out1, ref1)
    assert err1 < 2e-3, f"case1 (f32) max abs err {err1}"

    # ---- Case 2: BN + proj, longer L (multi-tile two-pass BN path), f32 ------
    cfg2 = dict(stride=1, padding=1, res_padding=1, act="leakyrelu",
                use_bn=True, use_proj=True)
    channels2 = [4, 8, 16, 16]
    params2 = init_encoder(kp2, channels2, [3, 3], 1, 8, [3, 1],
                           use_bn=cfg2["use_bn"], use_proj=cfg2["use_proj"])
    x2 = jax.random.normal(kx2, (2, channels2[0], 1024), jnp.float32)
    ref2 = jax.block_until_ready(ref_forward(params2, x2, **cfg2))

    out2 = jax.block_until_ready(encoder_forward(params2, x2, dtype=jnp.float32, **cfg2))
    assert out2.shape == ref2.shape, (out2.shape, ref2.shape)
    err2 = _max_abs_err(out2, ref2)
    assert err2 < 2e-3, f"case2 (f32) max abs err {err2}"

    # ---- Case 3: same as case 2 but bf16 storage / MXU inputs (fast path) ----
    # Loose sanity tolerance: bf16 rounding through several BN-normalized layers.
    out3 = jax.block_until_ready(encoder_forward(params2, x2, dtype=jnp.bfloat16, **cfg2))
    err3 = _max_abs_err(out3, ref2)
    assert err3 < 2.5e-1, f"case3 (bf16) max abs err {err3}"

    print("KERNEL_OK")
</pallas_src>

<mosaic_0001>
module attributes {stable_mosaic.version = 11 : i64} {
  func.func @kernel(%arg0: i32, %arg1: i32, %arg2: memref<1x4x128xf32, #tpu.memory_space<vmem>>, %arg3: memref<1x4x128xf32, #tpu.memory_space<vmem>>, %arg4: memref<8x12xf32, #tpu.memory_space<vmem>>, %arg5: memref<8x1xf32, #tpu.memory_space<vmem>>, %arg6: memref<1x8x128xf32, #tpu.memory_space<vmem>>) attributes {dimension_semantics = [#tpu.dimension_semantics<parallel>, #tpu.dimension_semantics<parallel>], iteration_bounds = array<i64: 2, 1>, scalar_prefetch = 0 : i64, scratch_operands = 0 : i64, tpu.core_type = #tpu.core_type<tc>, window_params = [{transform_indices = @transform_0, window_bounds = array<i64: 1, 4, 128>}, {transform_indices = @transform_1, window_bounds = array<i64: 1, 4, 128>}, {pipeline_mode = #tpu.pipeline_mode<synchronous>, transform_indices = @transform_2, window_bounds = array<i64: 8, 12>}, {pipeline_mode = #tpu.pipeline_mode<synchronous>, transform_indices = @transform_3, window_bounds = array<i64: 8, 1>}, {transform_indices = @transform_4, window_bounds = array<i64: 1, 8, 128>}]} {
    %c0 = arith.constant 0 : index
    %c0_0 = arith.constant 0 : index
    %c0_1 = arith.constant 0 : index
    %0 = vector.load %arg2[%c0, %c0_0, %c0_1] : memref<1x4x128xf32, #tpu.memory_space<vmem>>, vector<1x4x128xf32>
    %1 = vector.shape_cast %0 : vector<1x4x128xf32> to vector<4x128xf32>
    %c0_2 = arith.constant 0 : index
    %c0_3 = arith.constant 0 : index
    %c0_4 = arith.constant 0 : index
    %2 = vector.load %arg3[%c0_2, %c0_3, %c0_4] : memref<1x4x128xf32, #tpu.memory_space<vmem>>, vector<1x4x128xf32>
    %3 = vector.shape_cast %2 : vector<1x4x128xf32> to vector<4x128xf32>
    %4 = vector.extract_strided_slice %3 {offsets = [0, 0], sizes = [4, 2], strides = [1, 1]} : vector<4x128xf32> to vector<4x2xf32>
    %5 = tpu.concatenate %1, %4 in 1 : vector<4x128xf32>, vector<4x2xf32> -> vector<4x130xf32>
    %6 = vector.extract_strided_slice %5 {offsets = [0, 0], sizes = [4, 128], strides = [1, 1]} : vector<4x130xf32> to vector<4x128xf32>
    %7 = vector.extract_strided_slice %5 {offsets = [0, 1], sizes = [4, 128], strides = [1, 1]} : vector<4x130xf32> to vector<4x128xf32>
    %8 = vector.extract_strided_slice %5 {offsets = [0, 2], sizes = [4, 128], strides = [1, 1]} : vector<4x130xf32> to vector<4x128xf32>
    %9 = tpu.concatenate %6, %7, %8 in 0 : vector<4x128xf32>, vector<4x128xf32>, vector<4x128xf32> -> vector<12x128xf32>
    %c0_5 = arith.constant 0 : index
    %c0_6 = arith.constant 0 : index
    %10 = vector.load %arg4[%c0_5, %c0_6] : memref<8x12xf32, #tpu.memory_space<vmem>>, vector<8x12xf32>
    %cst = arith.constant dense<0.000000e+00> : vector<8x128xf32>
    %11 = tpu.matmul %10, %9, %cst {dimension_numbers = #tpu.dot_dimension_numbers<[1], [0], [0], [1], [0, 0, 1, 1], [], []>} : vector<8x12xf32>, vector<12x128xf32>, vector<8x128xf32> -> vector<8x128xf32>
    %c0_7 = arith.constant 0 : index
    %c0_8 = arith.constant 0 : index
    %12 = vector.load %arg5[%c0_7, %c0_8] : memref<8x1xf32, #tpu.memory_space<vmem>>, vector<8x1xf32>
    %13 = vector.broadcast %12 : vector<8x1xf32> to vector<8x128xf32>
    %14 = arith.addf %11, %13 : vector<8x128xf32>
    %cst_9 = arith.constant 0.000000e+00 : f32
    %15 = vector.broadcast %cst_9 : f32 to vector<8x128xf32>
    %16 = arith.cmpf oge, %14, %15 : vector<8x128xf32>
    %cst_10 = arith.constant 0.00999999977 : f32
    %17 = vector.broadcast %cst_10 : f32 to vector<8x128xf32>
    %18 = arith.mulf %17, %14 : vector<8x128xf32>
    %19 = arith.select %16, %14, %18 : vector<8x128xi1>, vector<8x128xf32>
    %20 = vector.shape_cast %19 : vector<8x128xf32> to vector<1x8x128xf32>
    %c0_11 = arith.constant 0 : index
    %c0_12 = arith.constant 0 : index
    %c0_13 = arith.constant 0 : index
    %21 = vector.load %arg6[%c0_11, %c0_12, %c0_13] : memref<1x8x128xf32, #tpu.memory_space<vmem>>, vector<1x8x128xf32>
    tpu.vector_store %arg6[%c0_11, %c0_12, %c0_13], %20 {strides = array<i32>} : memref<1x8x128xf32, #tpu.memory_space<vmem>>, vector<1x8x128xf32>,
    return
  }
  func.func @transform_0(%arg0: i32, %arg1: i32) -> (i32, i32, i32) {
    %c0_i32 = arith.constant 0 : i32
    %c0_i32_0 = arith.constant 0 : i32
    return %arg0, %c0_i32, %arg1 : i32, i32, i32
  }
  func.func @transform_1(%arg0: i32, %arg1: i32) -> (i32, i32, i32) {
    %c1_i32 = arith.constant 1 : i32
    %0 = arith.addi %arg1, %c1_i32 : i32
    %c0_i32 = arith.constant 0 : i32
    %c0_i32_0 = arith.constant 0 : i32
    return %arg0, %c0_i32, %0 : i32, i32, i32
  }
  func.func @transform_2(%arg0: i32, %arg1: i32) -> (i32, i32) {
    %c0_i32 = arith.constant 0 : i32
    %c0_i32_0 = arith.constant 0 : i32
    %c0_i32_1 = arith.constant 0 : i32
    return %c0_i32, %c0_i32_0 : i32, i32
  }
  func.func @transform_3(%arg0: i32, %arg1: i32) -> (i32, i32) {
    %c0_i32 = arith.constant 0 : i32
    %c0_i32_0 = arith.constant 0 : i32
    %c0_i32_1 = arith.constant 0 : i32
    return %c0_i32, %c0_i32_0 : i32, i32
  }
  func.func @transform_4(%arg0: i32, %arg1: i32) -> (i32, i32, i32) {
    %c0_i32 = arith.constant 0 : i32
    %c0_i32_0 = arith.constant 0 : i32
    return %arg0, %c0_i32, %arg1 : i32, i32, i32
  }
}

module attributes {stable_mosaic.version = 11 : i64} {
  func.func @kernel(%arg0: i32, %arg1: i32, %arg2: memref<1x8x128xf32, #tpu.memory_space<vmem>>, %arg3: memref<1x8x128xf32, #tpu.memory_space<vmem>>, %arg4: memref<16x24xf32, #tpu.memory_space<vmem>>, %arg5: memref<16x1xf32, #tpu.memory_space<vmem>>, %arg6: memref<1x16x128xf32, #tpu.memory_space<vmem>>) attributes {dimension_semantics = [#tpu.dimension_semantics<parallel>, #tpu.dimension_semantics<parallel>], iteration_bounds = array<i64: 2, 1>, scalar_prefetch = 0 : i64, scratch_operands = 0 : i64, tpu.core_type = #tpu.core_type<tc>, window_params = [{transform_indices = @transform_0, window_bounds = array<i64: 1, 8, 128>}, {transform_indices = @transform_1, window_bounds = array<i64: 1, 8, 128>}, {pipeline_mode = #tpu.pipeline_mode<synchronous>, transform_indices = @transform_2, window_bounds = array<i64: 16, 24>}, {pipeline_mode = #tpu.pipeline_mode<synchronous>, transform_indices = @transform_3, window_bounds = array<i64: 16, 1>}, {transform_indices = @transform_4, window_bounds = array<i64: 1, 16, 128>}]} {
    %c0 = arith.constant 0 : index
    %c0_0 = arith.constant 0 : index
    %c0_1 = arith.constant 0 : index
    %0 = vector.load %arg2[%c0, %c0_0, %c0_1] : memref<1x8x128xf32, #tpu.memory_space<vmem>>, vector<1x8x128xf32>
    %1 = vector.shape_cast %0 : vector<1x8x128xf32> to vector<8x128xf32>
    %c0_2 = arith.constant 0 : index
    %c0_3 = arith.constant 0 : index
    %c0_4 = arith.constant 0 : index
    %2 = vector.load %arg3[%c0_2, %c0_3, %c0_4] : memref<1x8x128xf32, #tpu.memory_space<vmem>>, vector<1x8x128xf32>
    %3 = vector.shape_cast %2 : vector<1x8x128xf32> to vector<8x128xf32>
    %4 = vector.extract_strided_slice %3 {offsets = [0, 0], sizes = [8, 2], strides = [1, 1]} : vector<8x128xf32> to vector<8x2xf32>
    %5 = tpu.concatenate %1, %4 in 1 : vector<8x128xf32>, vector<8x2xf32> -> vector<8x130xf32>
    %6 = vector.extract_strided_slice %5 {offsets = [0, 0], sizes = [8, 128], strides = [1, 1]} : vector<8x130xf32> to vector<8x128xf32>
    %7 = vector.extract_strided_slice %5 {offsets = [0, 1], sizes = [8, 128], strides = [1, 1]} : vector<8x130xf32> to vector<8x128xf32>
    %8 = vector.extract_strided_slice %5 {offsets = [0, 2], sizes = [8, 128], strides = [1, 1]} : vector<8x130xf32> to vector<8x128xf32>
    %9 = tpu.concatenate %6, %7, %8 in 0 : vector<8x128xf32>, vector<8x128xf32>, vector<8x128xf32> -> vector<24x128xf32>
    %c0_5 = arith.constant 0 : index
    %c0_6 = arith.constant 0 : index
    %10 = vector.load %arg4[%c0_5, %c0_6] : memref<16x24xf32, #tpu.memory_space<vmem>>, vector<16x24xf32>
    %cst = arith.constant dense<0.000000e+00> : vector<16x128xf32>
    %11 = tpu.matmul %10, %9, %cst {dimension_numbers = #tpu.dot_dimension_numbers<[1], [0], [0], [1], [0, 0, 1, 1], [], []>} : vector<16x24xf32>, vector<24x128xf32>, vector<16x128xf32> -> vector<16x128xf32>
    %c0_7 = arith.constant 0 : index
    %c0_8 = arith.constant 0 : index
    %12 = vector.load %arg5[%c0_7, %c0_8] : memref<16x1xf32, #tpu.memory_space<vmem>>, vector<16x1xf32>
    %13 = vector.broadcast %12 : vector<16x1xf32> to vector<16x128xf32>
    %14 = arith.addf %11, %13 : vector<16x128xf32>
    %cst_9 = arith.constant 0.000000e+00 : f32
    %15 = vector.broadcast %cst_9 : f32 to vector<16x128xf32>
    %16 = arith.cmpf oge, %14, %15 : vector<16x128xf32>
    %cst_10 = arith.constant 0.00999999977 : f32
    %17 = vector.broadcast %cst_10 : f32 to vector<16x128xf32>
    %18 = arith.mulf %17, %14 : vector<16x128xf32>
    %19 = arith.select %16, %14, %18 : vector<16x128xi1>, vector<16x128xf32>
    %20 = vector.shape_cast %19 : vector<16x128xf32> to vector<1x16x128xf32>
    %c0_11 = arith.constant 0 : index
    %c0_12 = arith.constant 0 : index
    %c0_13 = arith.constant 0 : index
    %21 = vector.load %arg6[%c0_11, %c0_12, %c0_13] : memref<1x16x128xf32, #tpu.memory_space<vmem>>, vector<1x16x128xf32>
    tpu.vector_store %arg6[%c0_11, %c0_12, %c0_13], %20 {strides = array<i32>} : memref<1x16x128xf32, #tpu.memory_space<vmem>>, vector<1x16x128xf32>,
    return
  }
  func.func @transform_0(%arg0: i32, %arg1: i32) -> (i32, i32, i32) {
    %c0_i32 = arith.constant 0 : i32
    %c0_i32_0 = arith.constant 0 : i32
    return %arg0, %c0_i32, %arg1 : i32, i32, i32
  }
  func.func @transform_1(%arg0: i32, %arg1: i32) -> (i32, i32, i32) {
    %c1_i32 = arith.constant 1 : i32
    %0 = arith.addi %arg1, %c1_i32 : i32
    %c0_i32 = arith.constant 0 : i32
    %c0_i32_0 = arith.constant 0 : i32
    return %arg0, %c0_i32, %0 : i32, i32, i32
  }
  func.func @transform_2(%arg0: i32, %arg1: i32) -> (i32, i32) {
    %c0_i32 = arith.constant 0 : i32
    %c0_i32_0 = arith.constant 0 : i32
    %c0_i32_1 = arith.constant 0 : i32
    return %c0_i32, %c0_i32_0 : i32, i32
  }
  func.func @transform_3(%arg0: i32, %arg1: i32) -> (i32, i32) {
    %c0_i32 = arith.constant 0 : i32
    %c0_i32_0 = arith.constant 0 : i32
    %c0_i32_1 = arith.constant 0 : i32
    return %c0_i32, %c0_i32_0 : i32, i32
  }
  func.func @transform_4(%arg0: i32, %arg1: i32) -> (i32, i32, i32) {
    %c0_i32 = arith.constant 0 : i32
    %c0_i32_0 = arith.constant 0 : i32
    return %arg0, %c0_i32, %arg1 : i32, i32, i32
  }
}

module attributes {stable_mosaic.version = 11 : i64} {
  func.func @kernel(%arg0: i32, %arg1: i32, %arg2: memref<1x16x128xf32, #tpu.memory_space<vmem>>, %arg3: memref<1x16x128xf32, #tpu.memory_space<vmem>>, %arg4: memref<8x48xf32, #tpu.memory_space<vmem>>, %arg5: memref<8x1xf32, #tpu.memory_space<vmem>>, %arg6: memref<1x8x128xf32, #tpu.memory_space<vmem>>, %arg7: memref<1x8x2xf32, #tpu.memory_space<vmem>>) attributes {dimension_semantics = [#tpu.dimension_semantics<parallel>, #tpu.dimension_semantics<parallel>], iteration_bounds = array<i64: 2, 1>, scalar_prefetch = 0 : i64, scratch_operands = 0 : i64, tpu.core_type = #tpu.core_type<tc>, window_params = [{transform_indices = @transform_0, window_bounds = array<i64: 1, 16, 128>}, {transform_indices = @transform_1, window_bounds = array<i64: 1, 16, 128>}, {pipeline_mode = #tpu.pipeline_mode<synchronous>, transform_indices = @transform_2, window_bounds = array<i64: 8, 48>}, {pipeline_mode = #tpu.pipeline_mode<synchronous>, transform_indices = @transform_3, window_bounds = array<i64: 8, 1>}, {transform_indices = @transform_4, window_bounds = array<i64: 1, 8, 128>}, {transform_indices = @transform_5, window_bounds = array<i64: 1, 8, 2>}]} {
    %c0 = arith.constant 0 : index
    %c0_0 = arith.constant 0 : index
    %c0_1 = arith.constant 0 : index
    %0 = vector.load %arg2[%c0, %c0_0, %c0_1] : memref<1x16x128xf32, #tpu.memory_space<vmem>>, vector<1x16x128xf32>
    %1 = vector.shape_cast %0 : vector<1x16x128xf32> to vector<16x128xf32>
    %c0_2 = arith.constant 0 : index
    %c0_3 = arith.constant 0 : index
    %c0_4 = arith.constant 0 : index
    %2 = vector.load %arg3[%c0_2, %c0_3, %c0_4] : memref<1x16x128xf32, #tpu.memory_space<vmem>>, vector<1x16x128xf32>
    %3 = vector.shape_cast %2 : vector<1x16x128xf32> to vector<16x128xf32>
    %4 = vector.extract_strided_slice %3 {offsets = [0, 0], sizes = [16, 2], strides = [1, 1]} : vector<16x128xf32> to vector<16x2xf32>
    %5 = tpu.concatenate %1, %4 in 1 : vector<16x128xf32>, vector<16x2xf32> -> vector<16x130xf32>
    %6 = vector.extract_strided_slice %5 {offsets = [0, 0], sizes = [16, 128], strides = [1, 1]} : vector<16x130xf32> to vector<16x128xf32>
    %7 = vector.extract_strided_slice %5 {offsets = [0, 1], sizes = [16, 128], strides = [1, 1]} : vector<16x130xf32> to vector<16x128xf32>
    %8 = vector.extract_strided_slice %5 {offsets = [0, 2], sizes = [16, 128], strides = [1, 1]} : vector<16x130xf32> to vector<16x128xf32>
    %9 = tpu.concatenate %6, %7, %8 in 0 : vector<16x128xf32>, vector<16x128xf32>, vector<16x128xf32> -> vector<48x128xf32>
    %c0_5 = arith.constant 0 : index
    %c0_6 = arith.constant 0 : index
    %10 = vector.load %arg4[%c0_5, %c0_6] : memref<8x48xf32, #tpu.memory_space<vmem>>, vector<8x48xf32>
    %cst = arith.constant dense<0.000000e+00> : vector<8x128xf32>
    %11 = tpu.matmul %10, %9, %cst {dimension_numbers = #tpu.dot_dimension_numbers<[1], [0], [0], [1], [0, 0, 1, 1], [], []>} : vector<8x48xf32>, vector<48x128xf32>, vector<8x128xf32> -> vector<8x128xf32>
    %c0_7 = arith.constant 0 : index
    %c0_8 = arith.constant 0 : index
    %12 = vector.load %arg5[%c0_7, %c0_8] : memref<8x1xf32, #tpu.memory_space<vmem>>, vector<8x1xf32>
    %13 = vector.broadcast %12 : vector<8x1xf32> to vector<8x128xf32>
    %14 = arith.addf %11, %13 : vector<8x128xf32>
    %15 = tpu.iota {dimensions = array<i32: 1>} : vector<1x128xi32>
    %c128_i32 = arith.constant 128 : i32
    %16 = arith.muli %arg1, %c128_i32 : i32
    %17 = vector.broadcast %16 : i32 to vector<1x128xi32>
    %18 = arith.addi %15, %17 : vector<1x128xi32>
    %c16_i32 = arith.constant 16 : i32
    %19 = vector.broadcast %c16_i32 : i32 to vector<1x128xi32>
    %20 = arith.cmpi slt, %18, %19 : vector<1x128xi32>
    %cst_9 = arith.constant 0.000000e+00 : f32
    %21 = vector.shape_cast %20 : vector<1x128xi1> to vector<1x128xi1>
    %22 = vector.broadcast %21 : vector<1x128xi1> to vector<8x128xi1>
    %23 = vector.broadcast %cst_9 : f32 to vector<8x128xf32>
    %24 = arith.select %22, %14, %23 : vector<8x128xi1>, vector<8x128xf32>
    %cst_10 = arith.constant dense<0.000000e+00> : vector<8xf32>
    %25 = vector.multi_reduction <add>, %24, %cst_10 [1] : vector<8x128xf32> to vector<8xf32>
    %26 = vector.shape_cast %25 : vector<8xf32> to vector<8x1xf32>
    %27 = arith.mulf %24, %24 : vector<8x128xf32>
    %cst_11 = arith.constant dense<0.000000e+00> : vector<8xf32>
    %28 = vector.multi_reduction <add>, %27, %cst_11 [1] : vector<8x128xf32> to vector<8xf32>
    %29 = vector.shape_cast %28 : vector<8xf32> to vector<8x1xf32>
    %30 = tpu.concatenate %26, %29 in 1 : vector<8x1xf32>, vector<8x1xf32> -> vector<8x2xf32>
    %31 = vector.shape_cast %30 : vector<8x2xf32> to vector<1x8x2xf32>
    %c0_12 = arith.constant 0 : index
    %c0_13 = arith.constant 0 : index
    %c0_14 = arith.constant 0 : index
    %32 = vector.load %arg7[%c0_12, %c0_13, %c0_14] : memref<1x8x2xf32, #tpu.memory_space<vmem>>, vector<1x8x2xf32>
    tpu.vector_store %arg7[%c0_12, %c0_13, %c0_14], %31 {strides = array<i32>} : memref<1x8x2xf32, #tpu.memory_space<vmem>>, vector<1x8x2xf32>,
    %33 = vector.shape_cast %14 : vector<8x128xf32> to vector<1x8x128xf32>
    %c0_15 = arith.constant 0 : index
    %c0_16 = arith.constant 0 : index
    %c0_17 = arith.constant 0 : index
    %34 = vector.load %arg6[%c0_15, %c0_16, %c0_17] : memref<1x8x128xf32, #tpu.memory_space<vmem>>, vector<1x8x128xf32>
    tpu.vector_store %arg6[%c0_15, %c0_16, %c0_17], %33 {strides = array<i32>} : memref<1x8x128xf32, #tpu.memory_space<vmem>>, vector<1x8x128xf32>,
    return
  }
  func.func @transform_0(%arg0: i32, %arg1: i32) -> (i32, i32, i32) {
    %c0_i32 = arith.constant 0 : i32
    %c0_i32_0 = arith.constant 0 : i32
    return %arg0, %c0_i32, %arg1 : i32, i32, i32
  }
  func.func @transform_1(%arg0: i32, %arg1: i32) -> (i32, i32, i32) {
    %c1_i32 = arith.constant 1 : i32
    %0 = arith.addi %arg1, %c1_i32 : i32
    %c0_i32 = arith.constant 0 : i32
    %c0_i32_0 = arith.constant 0 : i32
    return %arg0, %c0_i32, %0 : i32, i32, i32
  }
  func.func @transform_2(%arg0: i32, %arg1: i32) -> (i32, i32) {
    %c0_i32 = arith.constant 0 : i32
    %c0_i32_0 = arith.constant 0 : i32
    %c0_i32_1 = arith.constant 0 : i32
    return %c0_i32, %c0_i32_0 : i32, i32
  }
  func.func @transform_3(%arg0: i32, %arg1: i32) -> (i32, i32) {
    %c0_i32 = arith.constant 0 : i32
    %c0_i32_0 = arith.constant 0 : i32
    %c0_i32_1 = arith.constant 0 : i32
    return %c0_i32, %c0_i32_0 : i32, i32
  }
  func.func @transform_4(%arg0: i32, %arg1: i32) -> (i32, i32, i32) {
    %c0_i32 = arith.constant 0 : i32
    %c0_i32_0 = arith.constant 0 : i32
    return %arg0, %c0_i32, %arg1 : i32, i32, i32
  }
  func.func @transform_5(%arg0: i32, %arg1: i32) -> (i32, i32, i32) {
    %c1_i32 = arith.constant 1 : i32
    %0 = arith.muli %arg0, %c1_i32 : i32
    %1 = arith.addi %0, %arg1 : i32
    %c0_i32 = arith.constant 0 : i32
    %c0_i32_0 = arith.constant 0 : i32
    %c0_i32_1 = arith.constant 0 : i32
    return %1, %c0_i32, %c0_i32_0 : i32, i32, i32
  }
}

module attributes {stable_mosaic.version = 11 : i64} {
  func.func @kernel(%arg0: i32, %arg1: i32, %arg2: memref<1x8x128xf32, #tpu.memory_space<vmem>>, %arg3: memref<8x1xf32, #tpu.memory_space<vmem>>, %arg4: memref<8x1xf32, #tpu.memory_space<vmem>>, %arg5: memref<1x8x128xf32, #tpu.memory_space<vmem>>) attributes {dimension_semantics = [#tpu.dimension_semantics<parallel>, #tpu.dimension_semantics<parallel>], iteration_bounds = array<i64: 2, 1>, scalar_prefetch = 0 : i64, scratch_operands = 0 : i64, tpu.core_type = #tpu.core_type<tc>, window_params = [{transform_indices = @transform_0, window_bounds = array<i64: 1, 8, 128>}, {pipeline_mode = #tpu.pipeline_mode<synchronous>, transform_indices = @transform_1, window_bounds = array<i64: 8, 1>}, {pipeline_mode = #tpu.pipeline_mode<synchronous>, transform_indices = @transform_2, window_bounds = array<i64: 8, 1>}, {transform_indices = @transform_3, window_bounds = array<i64: 1, 8, 128>}]} {
    %c0 = arith.constant 0 : index
    %c0_0 = arith.constant 0 : index
    %c0_1 = arith.constant 0 : index
    %0 = vector.load %arg2[%c0, %c0_0, %c0_1] : memref<1x8x128xf32, #tpu.memory_space<vmem>>, vector<1x8x128xf32>
    %1 = vector.shape_cast %0 : vector<1x8x128xf32> to vector<8x128xf32>
    %c0_2 = arith.constant 0 : index
    %c0_3 = arith.constant 0 : index
    %2 = vector.load %arg3[%c0_2, %c0_3] : memref<8x1xf32, #tpu.memory_space<vmem>>, vector<8x1xf32>
    %3 = vector.broadcast %2 : vector<8x1xf32> to vector<8x128xf32>
    %4 = arith.mulf %1, %3 : vector<8x128xf32>
    %c0_4 = arith.constant 0 : index
    %c0_5 = arith.constant 0 : index
    %5 = vector.load %arg4[%c0_4, %c0_5] : memref<8x1xf32, #tpu.memory_space<vmem>>, vector<8x1xf32>
    %6 = vector.broadcast %5 : vector<8x1xf32> to vector<8x128xf32>
    %7 = arith.addf %4, %6 : vector<8x128xf32>
    %cst = arith.constant 0.000000e+00 : f32
    %8 = vector.broadcast %cst : f32 to vector<8x128xf32>
    %9 = arith.cmpf oge, %7, %8 : vector<8x128xf32>
    %cst_6 = arith.constant 0.00999999977 : f32
    %10 = vector.broadcast %cst_6 : f32 to vector<8x128xf32>
    %11 = arith.mulf %10, %7 : vector<8x128xf32>
    %12 = arith.select %9, %7, %11 : vector<8x128xi1>, vector<8x128xf32>
    %13 = vector.shape_cast %12 : vector<8x128xf32> to vector<1x8x128xf32>
    %c0_7 = arith.constant 0 : index
    %c0_8 = arith.constant 0 : index
    %c0_9 = arith.constant 0 : index
    %14 = vector.load %arg5[%c0_7, %c0_8, %c0_9] : memref<1x8x128xf32, #tpu.memory_space<vmem>>, vector<1x8x128xf32>
    tpu.vector_store %arg5[%c0_7, %c0_8, %c0_9], %13 {strides = array<i32>} : memref<1x8x128xf32, #tpu.memory_space<vmem>>, vector<1x8x128xf32>,
    return
  }
  func.func @transform_0(%arg0: i32, %arg1: i32) -> (i32, i32, i32) {
    %c0_i32 = arith.constant 0 : i32
    %c0_i32_0 = arith.constant 0 : i32
    return %arg0, %c0_i32, %arg1 : i32, i32, i32
  }
  func.func @transform_1(%arg0: i32, %arg1: i32) -> (i32, i32) {
    %c0_i32 = arith.constant 0 : i32
    %c0_i32_0 = arith.constant 0 : i32
    %c0_i32_1 = arith.constant 0 : i32
    return %c0_i32, %c0_i32_0 : i32, i32
  }
  func.func @transform_2(%arg0: i32, %arg1: i32) -> (i32, i32) {
    %c0_i32 = arith.constant 0 : i32
    %c0_i32_0 = arith.constant 0 : i32
    %c0_i32_1 = arith.constant 0 : i32
    return %c0_i32, %c0_i32_0 : i32, i32
  }
  func.func @transform_3(%arg0: i32, %arg1: i32) -> (i32, i32, i32) {
    %c0_i32 = arith.constant 0 : i32
    %c0_i32_0 = arith.constant 0 : i32
    return %arg0, %c0_i32, %arg1 : i32, i32, i32
  }
}

module attributes {stable_mosaic.version = 11 : i64} {
  func.func @kernel(%arg0: i32, %arg1: i32, %arg2: memref<1x8x128xf32, #tpu.memory_space<vmem>>, %arg3: memref<16x8xf32, #tpu.memory_space<vmem>>, %arg4: memref<16x1xf32, #tpu.memory_space<vmem>>, %arg5: memref<1x16x128xf32, #tpu.memory_space<vmem>>, %arg6: memref<1x16x2xf32, #tpu.memory_space<vmem>>) attributes {dimension_semantics = [#tpu.dimension_semantics<parallel>, #tpu.dimension_semantics<parallel>], iteration_bounds = array<i64: 2, 1>, scalar_prefetch = 0 : i64, scratch_operands = 0 : i64, tpu.core_type = #tpu.core_type<tc>, window_params = [{transform_indices = @transform_0, window_bounds = array<i64: 1, 8, 128>}, {pipeline_mode = #tpu.pipeline_mode<synchronous>, transform_indices = @transform_1, window_bounds = array<i64: 16, 8>}, {pipeline_mode = #tpu.pipeline_mode<synchronous>, transform_indices = @transform_2, window_bounds = array<i64: 16, 1>}, {transform_indices = @transform_3, window_bounds = array<i64: 1, 16, 128>}, {transform_indices = @transform_4, window_bounds = array<i64: 1, 16, 2>}]} {
    %c0 = arith.constant 0 : index
    %c0_0 = arith.constant 0 : index
    %c0_1 = arith.constant 0 : index
    %0 = vector.load %arg2[%c0, %c0_0, %c0_1] : memref<1x8x128xf32, #tpu.memory_space<vmem>>, vector<1x8x128xf32>
    %1 = vector.shape_cast %0 : vector<1x8x128xf32> to vector<8x128xf32>
    %c0_2 = arith.constant 0 : index
    %c0_3 = arith.constant 0 : index
    %2 = vector.load %arg3[%c0_2, %c0_3] : memref<16x8xf32, #tpu.memory_space<vmem>>, vector<16x8xf32>
    %cst = arith.constant dense<0.000000e+00> : vector<16x128xf32>
    %3 = tpu.matmul %2, %1, %cst {dimension_numbers = #tpu.dot_dimension_numbers<[1], [0], [0], [1], [0, 0, 1, 1], [], []>} : vector<16x8xf32>, vector<8x128xf32>, vector<16x128xf32> -> vector<16x128xf32>
    %c0_4 = arith.constant 0 : index
    %c0_5 = arith.constant 0 : index
    %4 = vector.load %arg4[%c0_4, %c0_5] : memref<16x1xf32, #tpu.memory_space<vmem>>, vector<16x1xf32>
    %5 = vector.broadcast %4 : vector<16x1xf32> to vector<16x128xf32>
    %6 = arith.addf %3, %5 : vector<16x128xf32>
    %7 = tpu.iota {dimensions = array<i32: 1>} : vector<1x128xi32>
    %c128_i32 = arith.constant 128 : i32
    %8 = arith.muli %arg1, %c128_i32 : i32
    %9 = vector.broadcast %8 : i32 to vector<1x128xi32>
    %10 = arith.addi %7, %9 : vector<1x128xi32>
    %c16_i32 = arith.constant 16 : i32
    %11 = vector.broadcast %c16_i32 : i32 to vector<1x128xi32>
    %12 = arith.cmpi slt, %10, %11 : vector<1x128xi32>
    %cst_6 = arith.constant 0.000000e+00 : f32
    %13 = vector.shape_cast %12 : vector<1x128xi1> to vector<1x128xi1>
    %14 = vector.broadcast %13 : vector<1x128xi1> to vector<16x128xi1>
    %15 = vector.broadcast %cst_6 : f32 to vector<16x128xf32>
    %16 = arith.select %14, %6, %15 : vector<16x128xi1>, vector<16x128xf32>
    %cst_7 = arith.constant dense<0.000000e+00> : vector<16xf32>
    %17 = vector.multi_reduction <add>, %16, %cst_7 [1] : vector<16x128xf32> to vector<16xf32>
    %18 = vector.shape_cast %17 : vector<16xf32> to vector<16x1xf32>
    %19 = arith.mulf %16, %16 : vector<16x128xf32>
    %cst_8 = arith.constant dense<0.000000e+00> : vector<16xf32>
    %20 = vector.multi_reduction <add>, %19, %cst_8 [1] : vector<16x128xf32> to vector<16xf32>
    %21 = vector.shape_cast %20 : vector<16xf32> to vector<16x1xf32>
    %22 = tpu.concatenate %18, %21 in 1 : vector<16x1xf32>, vector<16x1xf32> -> vector<16x2xf32>
    %23 = vector.shape_cast %22 : vector<16x2xf32> to vector<1x16x2xf32>
    %c0_9 = arith.constant 0 : index
    %c0_10 = arith.constant 0 : index
    %c0_11 = arith.constant 0 : index
    %24 = vector.load %arg6[%c0_9, %c0_10, %c0_11] : memref<1x16x2xf32, #tpu.memory_space<vmem>>, vector<1x16x2xf32>
    tpu.vector_store %arg6[%c0_9, %c0_10, %c0_11], %23 {strides = array<i32>} : memref<1x16x2xf32, #tpu.memory_space<vmem>>, vector<1x16x2xf32>,
    %25 = vector.shape_cast %6 : vector<16x128xf32> to vector<1x16x128xf32>
    %c0_12 = arith.constant 0 : index
    %c0_13 = arith.constant 0 : index
    %c0_14 = arith.constant 0 : index
    %26 = vector.load %arg5[%c0_12, %c0_13, %c0_14] : memref<1x16x128xf32, #tpu.memory_space<vmem>>, vector<1x16x128xf32>
    tpu.vector_store %arg5[%c0_12, %c0_13, %c0_14], %25 {strides = array<i32>} : memref<1x16x128xf32, #tpu.memory_space<vmem>>, vector<1x16x128xf32>,
    return
  }
  func.func @transform_0(%arg0: i32, %arg1: i32) -> (i32, i32, i32) {
    %c0_i32 = arith.constant 0 : i32
    %c0_i32_0 = arith.constant 0 : i32
    return %arg0, %c0_i32, %arg1 : i32, i32, i32
  }
  func.func @transform_1(%arg0: i32, %arg1: i32) -> (i32, i32) {
    %c0_i32 = arith.constant 0 : i32
    %c0_i32_0 = arith.constant 0 : i32
    %c0_i32_1 = arith.constant 0 : i32
    return %c0_i32, %c0_i32_0 : i32, i32
  }
  func.func @transform_2(%arg0: i32, %arg1: i32) -> (i32, i32) {
    %c0_i32 = arith.constant 0 : i32
    %c0_i32_0 = arith.constant 0 : i32
    %c0_i32_1 = arith.constant 0 : i32
    return %c0_i32, %c0_i32_0 : i32, i32
  }
  func.func @transform_3(%arg0: i32, %arg1: i32) -> (i32, i32, i32) {
    %c0_i32 = arith.constant 0 : i32
    %c0_i32_0 = arith.constant 0 : i32
    return %arg0, %c0_i32, %arg1 : i32, i32, i32
  }
  func.func @transform_4(%arg0: i32, %arg1: i32) -> (i32, i32, i32) {
    %c1_i32 = arith.constant 1 : i32
    %0 = arith.muli %arg0, %c1_i32 : i32
    %1 = arith.addi %0, %arg1 : i32
    %c0_i32 = arith.constant 0 : i32
    %c0_i32_0 = arith.constant 0 : i32
    %c0_i32_1 = arith.constant 0 : i32
    return %1, %c0_i32, %c0_i32_0 : i32, i32, i32
  }
}

module attributes {stable_mosaic.version = 11 : i64} {
  func.func @kernel(%arg0: i32, %arg1: i32, %arg2: memref<1x16x128xf32, #tpu.memory_space<vmem>>, %arg3: memref<16x1xf32, #tpu.memory_space<vmem>>, %arg4: memref<16x1xf32, #tpu.memory_space<vmem>>, %arg5: memref<1x16x128xf32, #tpu.memory_space<vmem>>, %arg6: memref<1x16x128xf32, #tpu.memory_space<vmem>>) attributes {dimension_semantics = [#tpu.dimension_semantics<parallel>, #tpu.dimension_semantics<parallel>], iteration_bounds = array<i64: 2, 1>, scalar_prefetch = 0 : i64, scratch_operands = 0 : i64, tpu.core_type = #tpu.core_type<tc>, window_params = [{transform_indices = @transform_0, window_bounds = array<i64: 1, 16, 128>}, {pipeline_mode = #tpu.pipeline_mode<synchronous>, transform_indices = @transform_1, window_bounds = array<i64: 16, 1>}, {pipeline_mode = #tpu.pipeline_mode<synchronous>, transform_indices = @transform_2, window_bounds = array<i64: 16, 1>}, {transform_indices = @transform_3, window_bounds = array<i64: 1, 16, 128>}, {transform_indices = @transform_4, window_bounds = array<i64: 1, 16, 128>}]} {
    %c0 = arith.constant 0 : index
    %c0_0 = arith.constant 0 : index
    %c0_1 = arith.constant 0 : index
    %0 = vector.load %arg2[%c0, %c0_0, %c0_1] : memref<1x16x128xf32, #tpu.memory_space<vmem>>, vector<1x16x128xf32>
    %1 = vector.shape_cast %0 : vector<1x16x128xf32> to vector<16x128xf32>
    %c0_2 = arith.constant 0 : index
    %c0_3 = arith.constant 0 : index
    %2 = vector.load %arg3[%c0_2, %c0_3] : memref<16x1xf32, #tpu.memory_space<vmem>>, vector<16x1xf32>
    %3 = vector.broadcast %2 : vector<16x1xf32> to vector<16x128xf32>
    %4 = arith.mulf %1, %3 : vector<16x128xf32>
    %c0_4 = arith.constant 0 : index
    %c0_5 = arith.constant 0 : index
    %5 = vector.load %arg4[%c0_4, %c0_5] : memref<16x1xf32, #tpu.memory_space<vmem>>, vector<16x1xf32>
    %6 = vector.broadcast %5 : vector<16x1xf32> to vector<16x128xf32>
    %7 = arith.addf %4, %6 : vector<16x128xf32>
    %cst = arith.constant 0.000000e+00 : f32
    %8 = vector.broadcast %cst : f32 to vector<16x128xf32>
    %9 = arith.cmpf oge, %7, %8 : vector<16x128xf32>
    %cst_6 = arith.constant 0.00999999977 : f32
    %10 = vector.broadcast %cst_6 : f32 to vector<16x128xf32>
    %11 = arith.mulf %10, %7 : vector<16x128xf32>
    %12 = arith.select %9, %7, %11 : vector<16x128xi1>, vector<16x128xf32>
    %c0_7 = arith.constant 0 : index
    %c0_8 = arith.constant 0 : index
    %c0_9 = arith.constant 0 : index
    %13 = vector.load %arg5[%c0_7, %c0_8, %c0_9] : memref<1x16x128xf32, #tpu.memory_space<vmem>>, vector<1x16x128xf32>
    %14 = vector.shape_cast %13 : vector<1x16x128xf32> to vector<16x128xf32>
    %15 = arith.addf %12, %14 : vector<16x128xf32>
    %16 = vector.shape_cast %15 : vector<16x128xf32> to vector<1x16x128xf32>
    %c0_10 = arith.constant 0 : index
    %c0_11 = arith.constant 0 : index
    %c0_12 = arith.constant 0 : index
    %17 = vector.load %arg6[%c0_10, %c0_11, %c0_12] : memref<1x16x128xf32, #tpu.memory_space<vmem>>, vector<1x16x128xf32>
    tpu.vector_store %arg6[%c0_10, %c0_11, %c0_12], %16 {strides = array<i32>} : memref<1x16x128xf32, #tpu.memory_space<vmem>>, vector<1x16x128xf32>,
    return
  }
  func.func @transform_0(%arg0: i32, %arg1: i32) -> (i32, i32, i32) {
    %c0_i32 = arith.constant 0 : i32
    %c0_i32_0 = arith.constant 0 : i32
    return %arg0, %c0_i32, %arg1 : i32, i32, i32
  }
  func.func @transform_1(%arg0: i32, %arg1: i32) -> (i32, i32) {
    %c0_i32 = arith.constant 0 : i32
    %c0_i32_0 = arith.constant 0 : i32
    %c0_i32_1 = arith.constant 0 : i32
    return %c0_i32, %c0_i32_0 : i32, i32
  }
  func.func @transform_2(%arg0: i32, %arg1: i32) -> (i32, i32) {
    %c0_i32 = arith.constant 0 : i32
    %c0_i32_0 = arith.constant 0 : i32
    %c0_i32_1 = arith.constant 0 : i32
    return %c0_i32, %c0_i32_0 : i32, i32
  }
  func.func @transform_3(%arg0: i32, %arg1: i32) -> (i32, i32, i32) {
    %c0_i32 = arith.constant 0 : i32
    %c0_i32_0 = arith.constant 0 : i32
    return %arg0, %c0_i32, %arg1 : i32, i32, i32
  }
  func.func @transform_4(%arg0: i32, %arg1: i32) -> (i32, i32, i32) {
    %c0_i32 = arith.constant 0 : i32
    %c0_i32_0 = arith.constant 0 : i32
    return %arg0, %c0_i32, %arg1 : i32, i32, i32
  }
}

</mosaic_0001>

<bundles_post_ra>
// kernel: conv1d_encoder_forward.8
= control target key start
LH: loop header
LB: loop body
LE: loop exit
PB: predicated region body
PF: predicated region fallthrough
CT: control target
= control target key end

     0   :  { %s748_s18 = smov 0   ;;  %s750_s19 = smov 0   ;;  %s836_s0 = inlined_call_operand.vmem [shape: f32[2,16,256], index: 0, kind: input, shape index: {}, may-alias: {0,1}]   ;;  %s837_s1 = inlined_call_operand.vmem [shape: f32[2,16,256], index: 1, kind: input, shape index: {}, may-alias: {0,1}]   ;;  %s838_s2 = inlined_call_operand.vmem [shape: f32[8,48], index: 2, kind: input, shape index: {}]   ;;  %s839_s3 = inlined_call_operand.vmem [shape: f32[8,1], index: 3, kind: input, shape index: {}]   ;;  %s840_s4 = inlined_call_operand.vmem [shape: f32[2,8,128], index: 4, kind: output, shape index: {0}]   ;;  %s841_s5 = inlined_call_operand.vmem [shape: f32[2,8,2], index: 5, kind: output, shape index: {1}]  }
   0x1   :  { %s752_s20 = smov 0   ;;  %s754_s21 = smov 0  }
   0x2   :  { %s756_s22 = smov 0  }
   0x3 LB: > { %s28_s23 = sadd.s32 1, %s709_s21  ;;  %p44_p1 = scmp.ne.s32.totalorder %s701_s19, %s697_s18  ;;  %s713_s22 = sphi %s756_s22, %s16_s22   ;;  %s709_s21 = sphi %s754_s21, %s846_s21   ;;  %s705_s20 = sphi %s752_s20, %s845_s20   ;;  %s701_s19 = sphi %s750_s19, %s844_s19   ;;  %s697_s18 = sphi %s748_s18, %s843_s18  }
   0x4   : > { %p30_p0 = scmp.ge.s32.totalorder %s28_s23, 2  ;;  %p45_p2 = scmp.eq.s32.totalorder %s713_s22, 0 }
   0x5   : > { %s37_s26 = sadd.s32 1, %s701_s19  ;;  %p591_p5 = scmp.ge.s32.totalorder %s713_s22, 2 }
   0x6   : > { %s848_s23 = smov (%p30_p0, %s28_s23), 0  ;;  %p779_p3 = por %p45_p2, %p44_p1 }
   0x7   : > { %s32_s25 = ssub.s32 %s709_s21, %s848_s23  ;;  %204 = sbr.rel (%p591_p5) target bundleno = 24 (0x18), region = 24 }
   0x8   : > { %p35_p4 = scmp.eq.s32.totalorder %s32_s25, 0 }
   0xa   : > { %s787_s27 = scalar_select %p35_p4, %s701_s19, %s37_s26  }
   0xc   : > { %207 = sbr.rel (!%p779_p3) target bundleno = 18 (0x12), region = 28  ;;  %s209_s28 = sand.u32 (%p779_p3), 1, %s701_s19  }
   0xd   : > { %s608_s29 = sshll.u32 (%p779_p3), %s709_s21, 5  ;;  %s592_s30 = sshll.u32 (%p779_p3), %s209_s28, 4 }
   0xe   : > { %s215_s8 = scalar_lea.vmem (%p779_p3), %s836_s0, %s608_s29  ;;  %s211_s9 = scalar_lea.vmem (%p779_p3), [#allocation2], %s592_s30 }
   0xf   : > { %v246_v0 = vld [vmem:[%s215_s8] sm:$0xff] (%p779_p3)  ;;  %v248_v1 = vld [vmem:[%s215_s8 + $0x10] sm:$0xff] (%p779_p3) }
  0x10   : > { %247 = vst [vmem:[%s211_s9] sm:$0xff] (%p779_p3), %v246_v0 }
  0x11   : > { %249 = vst [vmem:[%s211_s9 + $0x8] sm:$0xff] %v248_v1 }
  0x12 PF: > { %255 = sbr.rel (!%p779_p3) target bundleno = 24 (0x18), region = 66  ;;  %s257_s10 = sand.u32 (%p779_p3), 1, %s701_s19  }
  0x13   : > { %s609_s11 = sshll.u32 (%p779_p3), %s709_s21, 5  ;;  %s595_s12 = sshll.u32 (%p779_p3), %s257_s10, 4 }
  0x14   : > { %s506_s15 = scalar_lea.vmem (%p779_p3), %s837_s1, %s609_s11  ;;  %s259_s16 = scalar_lea.vmem (%p779_p3), [#allocation3], %s595_s12 }
  0x15   : > { %v598_v2 = vld [vmem:[%s506_s15 + $0x8] sm:$0xff] (%p779_p3)  ;;  %v599_v3 = vld [vmem:[%s506_s15 + $0x18] sm:$0xff] (%p779_p3) }
  0x16   : > { %296 = vst [vmem:[%s259_s16] sm:$0xff] (%p779_p3), %v598_v2 }
  0x17   : > { %298 = vst [vmem:[%s259_s16 + $0x8] sm:$0xff] %v599_v3 }
  0x18 PF: > { %p600_p6 = scmp.ge.s32.totalorder %s713_s22, 1  ;;  %p303_p7 = scmp.lt.s32.totalorder %s713_s22, 3 }
  0x1a   : > { %p304_p8 = pnand %p600_p6, %p303_p7 }
  0x1b   : > { %s310_s17 = sand.u32 (!%p304_p8), 1, %s697_s18   ;;  %s715_s28 = smov (!%p304_p8), 126  }
  0x1c   : > { %307 = sbr.rel (%p304_p8) target bundleno = 421 (0x1a5), region = 104  ;;  %s601_s24 = sshll.u32 (!%p304_p8), %s310_s17, 4 }
  0x1d   : > { %s312_s25 = scalar_lea.vmem (!%p304_p8), [#allocation2], %s601_s24  ;;  %s319_s26 = scalar_lea.vmem (!%p304_p8), [#allocation3], %s601_s24 }
  0x1e   : > { %s716_s29 = smov (!%p304_p8), 127   ;;  %p356_p9 = scmp.lt.s32.totalorder (!%p304_p8), %s705_s20, 1 }
  0x21   : > { %v370_v4 = vld [vmem:[%s312_s25 + $0x8] sm:$0xff]  ;;  %v371_v7 = vld [vmem:[%s319_s26] sm:$0xff]  ;;  %v717_v11 = vmov 0   ;;  %vm398_vm0 = vcmask 1031168   ;;  %vm385_vm1 = vcmask 1039360   ;;  %vm410_vm2 = vcmask 392192  }
  0x22   : > { %v372_v5 = vld [vmem:[%s319_s26 + $0x8] sm:$0xff]  ;;  %v369_v8 = vld [vmem:[%s312_s25] sm:$0xff]  ;;  %673 = vset.pattern.permute.xlu2 %v717_v11  ;;  %674 = vset.pattern.permute.xlu0 %v717_v11  ;;  %v434_v29 = vlaneseq  ;;  %s850_s20 = smov (!%p356_p9, %s705_s20), 1  ;;  %vm448_vm4 = vcmask 7168   ;;  %vm450_vm5 = vcmask 15360  }
  0x23   : > { %v653_v6 = vpack.i.bf16 %v372_v5, %v370_v4  ;;  %v658_v9 = vpack.i.bf16 %v371_v7, %v369_v8  ;;  %v404_v10 = vld [vmem:[%s839_s3] sm:$0xff]  ;;  %s603_s8 = sshll.u32 %s850_s20, 3 }
  0x24   : > { %407 = vperm.xlu2 %673, %v404_v10   ;;  %v403_v28 = vld [vmem:[%s838_s2] sm:$0xff]  ;;  %v435_v30 = vand.u32 127, %v434_v29  ;;  %s362_s11 = scalar_lea.vmem %s840_s4, %s603_s8  ;;  %s367_s14 = scalar_lea.vmem %s841_s5, %s603_s8 }
  0x25   : > { %654 = vrot.lane.b32.xlu0 %v653_v6, %s715_s28  ;;  %664 = vrot.lane.b32.xlu1 %v653_v6, %s716_s29 }
  0x26   : > { %vm439_vm3 = vcmp.lt.s32.totalorder %v435_v30, 16 }
  0x2d   : > { %659 = vrot.lane.b32.xlu0 %v658_v9, %s715_s28  ;;  %669 = vrot.lane.b32.xlu1 %v658_v9, %s716_s29 }
  0x7e   : > { %v408_v31 = vpop.permute.xlu2 %407 }
  0x97   : > { %v655_v12 = vpop.permute.xlu0 %654  ;;  %v665_v13 = vpop.permute.xlu1 %664 }
  0x98   : > { %v657_v14 = vunpack.i.h.bf16 %v655_v12  ;;  %v656_v15 = vunpack.i.l.bf16 %v655_v12  ;;  %v667_v17 = vunpack.i.h.bf16 %v665_v13  ;;  %v666_v18 = vunpack.i.l.bf16 %v665_v13 }
  0x9a   : > { %v400_v16 = vsel %vm398_vm0, %v656_v15, %v657_v14  ;;  %v387_v26 = vsel %vm385_vm1, %v666_v18, %v667_v17 }
  0x9b   : > { %424 = vmatpush.msra.mxu0 %v400_v16 }
  0x9f   : > { %v660_v19 = vpop.permute.xlu0 %659  ;;  %v670_v20 = vpop.permute.xlu1 %669 }
  0xa0   : > { %v662_v21 = vunpack.i.h.bf16 %v660_v19  ;;  %v661_v22 = vunpack.i.l.bf16 %v660_v19  ;;  %v672_v23 = vunpack.i.h.bf16 %v670_v20  ;;  %v671_v24 = vunpack.i.l.bf16 %v670_v20 }
  0xa2   : > { %v399_v25 = vsel %vm398_vm0, %v661_v22, %v662_v21  ;;  %v386_v27 = vsel %vm385_vm1, %v671_v24, %v672_v23 }
  0xa3   : > { %425 = vmatpush.msra.mxu0 %v399_v25 }
  0xa5   : > { %426 = vmatpush.msra.mxu0 %v387_v26 }
  0xa7   : > { %427 = vmatpush.msra.mxu0 %v386_v27 }
  0xa9   : > { %428 = vmatpush.msra.mxu0 %v370_v4 }
  0xab   : > { %429 = vmatpush.msra.mxu0 %v369_v8 }
  0xac   : > { %605 = vmatmul.msk.f32.vlgmr.msra.gmra.mxu0 %vm410_vm2, %v403_v28 }
 0x129   : > { %v431_v32 = vpop.f32.mrf.mxu0 }
 0x12a   : > { %v432_v33 = vadd.f32 %v431_v32, %v408_v31 }
 0x12c   : > { %452 = vst [vmem:[%s362_s11] sm:$0xff] %v432_v33  ;;  %v442_v34 = vsel %vm439_vm3, %v432_v33, 0.0 }
 0x12d   : > { %443 = vadd.xlane.f32.xlu2 %v442_v34  ;;  %v445_v35 = vmul.f32 %v442_v34, %v442_v34 }
 0x12f   : > { %446 = vadd.xlane.f32.xlu0 %v445_v35 }
 0x1a0   : > { %v444_v36 = vpop.xlane.xlu2 %443 }
 0x1a2   : > { %v447_v37 = vpop.xlane.xlu0 %446 }
 0x1a3   : > { %v449_v38 = vsel %vm448_vm4, %v444_v36, %v447_v37 }
 0x1a4   : > { %451 = vst.msk [vmem:[%s367_s14] sm:$0xff] %vm450_vm5, %v449_v38 }
 0x1a5 PF: > { %s16_s22 = sadd.s32 1, %s713_s22   ;;  %s843_s18 = smov %s701_s19 }
 0x1a6   : > { %p13_p10 = scmp.ge.s32.totalorder %s16_s22, 4   ;;  %s844_s19 = smov %s787_s27 }
 0x1a7   : > { %s845_s20 = smov %s709_s21  ;;  %s846_s21 = smov %s848_s23 }
 0x1a8   :  { %15 = sbr.rel (!%p13_p10) target bundleno = 3 (0x3), region = 167 }

// kernel: conv1d_encoder_forward.7
= control target key start
LH: loop header
LB: loop body
LE: loop exit
PB: predicated region body
PF: predicated region fallthrough
CT: control target
= control target key end

     0   :  { %s552_s15 = smov 0   ;;  %s554_s16 = smov 0   ;;  %s605_s0 = inlined_call_operand.vmem [shape: f32[2,8,256], index: 0, kind: input, shape index: {}, may-alias: {0,1}]   ;;  %s606_s1 = inlined_call_operand.vmem [shape: f32[2,8,256], index: 1, kind: input, shape index: {}, may-alias: {0,1}]   ;;  %s607_s2 = inlined_call_operand.vmem [shape: f32[16,24], index: 2, kind: input, shape index: {}]   ;;  %s608_s3 = inlined_call_operand.vmem [shape: f32[16,1], index: 3, kind: input, shape index: {}]   ;;  %s609_s4 = inlined_call_operand.vmem [shape: f32[2,16,128], index: 4, kind: output, shape index: {}]  }
   0x1   :  { %s556_s17 = smov 0  }
   0x2 LB: > { %s26_s18 = sadd.s32 1, %s518_s16  ;;  %p442_p0 = scmp.ge.s32.totalorder %s522_s17, 1  ;;  %s522_s17 = sphi %s556_s17, %s14_s17   ;;  %s518_s16 = sphi %s554_s16, %s611_s16   ;;  %s514_s15 = sphi %s552_s15, %s610_s15  }
   0x3   : > { %p28_p1 = scmp.ge.s32.totalorder %s26_s18, 2  ;;  %p200_p2 = scmp.lt.s32.totalorder %s522_s17, 3 }
   0x5   : > { %s613_s18 = smov (%p28_p1, %s26_s18), 0  ;;  %p201_p3 = pnand %p442_p0, %p200_p2 }
   0x6   : > { %p241_p4 = scmp.lt.s32.totalorder (!%p201_p3), %s514_s15, 1  ;;  %s524_s27 = smov (!%p201_p3), 126  }
   0x7   : > { %204 = sbr.rel (%p201_p3) target bundleno = 281 (0x119), region = 36  ;;  %s525_s28 = smov (!%p201_p3), 127  }
   0xc   : > { %s615_s15 = smov (!%p241_p4, %s514_s15), 1  ;;  %v526_v3 = vmov 0   ;;  %v287_v4 = vld [vmem:[%s608_s3] sm:$0xff]  ;;  %v288_v5 = vld [vmem:[%s608_s3 + $0x8] sm:$0xff]  ;;  %vm282_vm0 = vcmask 1031168   ;;  %vm275_vm1 = vcmask 1039360  }
   0xd   : > { %s570_s19 = sshll.u32 %s615_s15, 4  ;;  %498 = vset.pattern.permute.xlu1 %v526_v3  ;;  %499 = vset.pattern.permute.xlu0 %v526_v3  ;;  %v285_v14 = vld [vmem:[%s607_s2] sm:$0xff]  ;;  %vm299_vm2 = vcmask 195584   ;;  %v286_v15 = vld [vmem:[%s607_s2 + $0x8] sm:$0xff] }
   0xe   : > { %s248_s22 = scalar_lea.vmem %s605_s0, %s570_s19  ;;  %s455_s23 = sadd.s32 8, %s570_s19  ;;  %291 = vperm.xlu1 %498, %v287_v4  }
   0xf   : > { %s257_s26 = scalar_lea.vmem %s606_s1, %s455_s23  ;;  %v267_v0 = vld [vmem:[%s248_s22] sm:$0xff]  ;;  %s266_s13 = scalar_lea.vmem %s609_s4, %s570_s19 }
  0x10   : > { %v268_v1 = vld [vmem:[%s257_s26] sm:$0xff] }
  0x11   : > { %v488_v2 = vpack.i.bf16 %v268_v1, %v267_v0 }
  0x13   : > { %489 = vrot.lane.b32.xlu0 %v488_v2, %s524_s27 }
  0x16   : > { %296 = vperm.xlu1 %498, %v288_v5  }
  0x1b   : > { %494 = vrot.lane.b32.xlu0 %v488_v2, %s525_s28 }
  0x80   : > { %v292_v16 = vpop.permute.xlu1 %291 }
  0x85   : > { %v490_v6 = vpop.permute.xlu0 %489 }
  0x86   : > { %v492_v7 = vunpack.i.h.bf16 %v490_v6  ;;  %v491_v8 = vunpack.i.l.bf16 %v490_v6 }
  0x88   : > { %v283_v9 = vsel %vm282_vm0, %v491_v8, %v492_v7  ;;  %v297_v17 = vpop.permute.xlu1 %296 }
  0x89   : > { %319 = vmatpush.msra.mxu0 %v283_v9  ;;  %458 = vmatpush.msra.mxu1 %v283_v9 }
  0x8d   : > { %v495_v10 = vpop.permute.xlu0 %494 }
  0x8e   : > { %v497_v11 = vunpack.i.h.bf16 %v495_v10  ;;  %v496_v12 = vunpack.i.l.bf16 %v495_v10 }
  0x90   : > { %v276_v13 = vsel %vm275_vm1, %v496_v12, %v497_v11 }
  0x91   : > { %320 = vmatpush.msra.mxu0 %v276_v13  ;;  %459 = vmatpush.msra.mxu1 %v276_v13 }
  0x93   : > { %321 = vmatpush.msra.mxu0 %v267_v0  ;;  %460 = vmatpush.msra.mxu1 %v267_v0 }
  0x94   : > { %449 = vmatmul.msk.f32.vlgmr.msra.gmra.mxu0 %vm299_vm2, %v285_v14  ;;  %450 = vmatmul.msk.f32.vlgmr.msra.gmra.mxu1 %vm299_vm2, %v286_v15 }
 0x111   : > { %v323_v18 = vpop.f32.mrf.mxu0  ;;  %v326_v19 = vpop.f32.mrf.mxu1 }
 0x112   : > { %v324_v20 = vadd.f32 %v323_v18, %v292_v16  ;;  %v327_v21 = vadd.f32 %v326_v19, %v297_v17 }
 0x114   : > { %vm329_vm3 = vcmp.ge.f32.partialorder %v324_v20, 0.0  ;;  %v331_v22 = vmul.f32 0.01, %v324_v20  ;;  %vm330_vm4 = vcmp.ge.f32.partialorder %v327_v21, 0.0  ;;  %v332_v23 = vmul.f32 0.01, %v327_v21 }
 0x116   : > { %v333_v24 = vsel %vm329_vm3, %v324_v20, %v331_v22  ;;  %v334_v25 = vsel %vm330_vm4, %v327_v21, %v332_v23 }
 0x117   : > { %335 = vst [vmem:[%s266_s13] sm:$0xff] %v333_v24 }
 0x118   : > { %336 = vst [vmem:[%s266_s13 + $0x8] sm:$0xff] %v334_v25 }
 0x119 PF: > { %s14_s17 = sadd.s32 1, %s522_s17   ;;  %s610_s15 = smov %s518_s16 }
 0x11a   : > { %p11_p5 = scmp.ge.s32.totalorder %s14_s17, 4   ;;  %s611_s16 = smov %s613_s18 }
 0x11c   :  { %13 = sbr.rel (!%p11_p5) target bundleno = 2 (0x2), region = 69 }

// kernel: conv1d_encoder_forward.6
= control target key start
LH: loop header
LB: loop body
LE: loop exit
PB: predicated region body
PF: predicated region fallthrough
CT: control target
= control target key end

     0   :  { %s522_s15 = smov 0   ;;  %s524_s16 = smov 0   ;;  %s569_s0 = inlined_call_operand.vmem [shape: f32[2,4,256], index: 0, kind: input, shape index: {}, may-alias: {0,1}]   ;;  %s570_s1 = inlined_call_operand.vmem [shape: f32[2,4,256], index: 1, kind: input, shape index: {}, may-alias: {0,1}]   ;;  %s571_s2 = inlined_call_operand.vmem [shape: f32[8,12], index: 2, kind: input, shape index: {}]   ;;  %s572_s3 = inlined_call_operand.vmem [shape: f32[8,1], index: 3, kind: input, shape index: {}]   ;;  %s573_s4 = inlined_call_operand.vmem [shape: f32[2,8,128], index: 4, kind: output, shape index: {}]  }
   0x1   :  { %s526_s17 = smov 0  }
   0x2 LB: > { %s26_s18 = sadd.s32 1, %s488_s16  ;;  %p422_p0 = scmp.ge.s32.totalorder %s492_s17, 1  ;;  %s492_s17 = sphi %s526_s17, %s14_s17   ;;  %s488_s16 = sphi %s524_s16, %s575_s16   ;;  %s484_s15 = sphi %s522_s15, %s574_s15  }
   0x3   : > { %p28_p1 = scmp.ge.s32.totalorder %s26_s18, 2  ;;  %p200_p2 = scmp.lt.s32.totalorder %s492_s17, 3 }
   0x5   : > { %s577_s18 = smov (%p28_p1, %s26_s18), 0  ;;  %p201_p3 = pnand %p422_p0, %p200_p2 }
   0x6   : > { %p240_p4 = scmp.lt.s32.totalorder (!%p201_p3), %s484_s15, 1  ;;  %s494_s24 = smov (!%p201_p3), 126  }
   0x7   : > { %204 = sbr.rel (%p201_p3) target bundleno = 275 (0x113), region = 36  ;;  %s495_s28 = smov (!%p201_p3), 127  }
   0xc   : > { %s579_s15 = smov (!%p240_p4, %s484_s15), 1  ;;  %v287_v5 = vld [vmem:[%s572_s3] sm:$0xff]  ;;  %v496_v6 = vmov 0   ;;  %vm282_vm0 = vcmask 1031168   ;;  %vm275_vm1 = vcmask 1039360   ;;  %vm284_vm2 = vcmask 1043456  }
   0xd   : > { %s540_s19 = sshll.u32 %s579_s15, 3  ;;  %468 = vset.pattern.permute.xlu1 %v496_v6  ;;  %469 = vset.pattern.permute.xlu0 %v496_v6  ;;  %v286_v15 = vld [vmem:[%s571_s2] sm:$0xff]  ;;  %vm293_vm3 = vcmask 97280  }
   0xe   : > { %s247_s22 = scalar_lea.vmem %s569_s0, %s540_s19  ;;  %s434_s23 = sadd.s32 4, %s540_s19 }
   0xf   : > { %v265_v0 = vld [vmem:[%s247_s22] sm:$0xf]  ;;  %s256_s27 = scalar_lea.vmem %s570_s1, %s434_s23  ;;  %s264_s9 = scalar_lea.vmem %s573_s4, %s540_s19 }
  0x10   : > { %278 = vrot.lane.b32.xlu0 %v265_v0, %s494_s24  ;;  %v269_v1 = vrot.slane %v265_v0, 4  ;;  %v266_v2 = vld [vmem:[%s256_s27] sm:$0xf] }
  0x11   : > { %v270_v3 = vrot.slane %v266_v2, 4 }
  0x13   : > { %v463_v4 = vpack.i.bf16 %v270_v3, %v269_v1 }
  0x15   : > { %464 = vrot.lane.b32.xlu1 %v463_v4, %s495_s28 }
  0x18   : > { %280 = vrot.lane.b32.xlu0 %v266_v2, %s494_s24 }
  0x1d   : > { %290 = vperm.xlu1 %468, %v287_v5  }
  0x82   : > { %v279_v7 = vpop.permute.xlu0 %278 }
  0x87   : > { %v465_v8 = vpop.permute.xlu1 %464 }
  0x88   : > { %v467_v9 = vunpack.i.h.bf16 %v465_v8  ;;  %v466_v10 = vunpack.i.l.bf16 %v465_v8 }
  0x8a   : > { %v281_v11 = vpop.permute.xlu0 %280  ;;  %v276_v13 = vsel %vm275_vm1, %v466_v10, %v467_v9 }
  0x8b   : > { %v283_v12 = vsel %vm282_vm0, %v279_v7, %v281_v11  ;;  %v285_v14 = vsel %vm284_vm2, %v265_v0, %v276_v13 }
  0x8c   : > { %428 = vmatpush.msk.msra.mxu0 %vm284_vm2, %v283_v12 }
  0x8e   : > { %314 = vmatpush.msra.mxu0 %v285_v14 }
  0x8f   : > { %429 = vmatmul.msk.f32.vlgmr.msra.gmra.mxu0 %vm293_vm3, %v286_v15  ;;  %v291_v16 = vpop.permute.xlu1 %290 }
 0x10c   : > { %v316_v17 = vpop.f32.mrf.mxu0 }
 0x10d   : > { %v317_v18 = vadd.f32 %v316_v17, %v291_v16 }
 0x10f   : > { %vm319_vm4 = vcmp.ge.f32.partialorder %v317_v18, 0.0  ;;  %v320_v19 = vmul.f32 0.01, %v317_v18 }
 0x111   : > { %v321_v20 = vsel %vm319_vm4, %v317_v18, %v320_v19 }
 0x112   : > { %322 = vst [vmem:[%s264_s9] sm:$0xff] %v321_v20 }
 0x113 PF: > { %s14_s17 = sadd.s32 1, %s492_s17   ;;  %s574_s15 = smov %s488_s16 }
 0x114   : > { %p11_p5 = scmp.ge.s32.totalorder %s14_s17, 4   ;;  %s575_s16 = smov %s577_s18 }
 0x116   :  { %13 = sbr.rel (!%p11_p5) target bundleno = 2 (0x2), region = 69 }

// kernel: conv1d_encoder_forward.9
= control target key start
LH: loop header
LB: loop body
LE: loop exit
PB: predicated region body
PF: predicated region fallthrough
CT: control target
= control target key end

     0   :  { %s370_s12 = smov 0   ;;  %s372_s13 = smov 0   ;;  %s406_s0 = inlined_call_operand.vmem [shape: f32[2,8,128], index: 0, kind: input, shape index: {}]   ;;  %s407_s1 = inlined_call_operand.vmem [shape: f32[8,1], index: 1, kind: input, shape index: {}]   ;;  %s408_s2 = inlined_call_operand.vmem [shape: f32[8,1], index: 2, kind: input, shape index: {}]   ;;  %s409_s3 = inlined_call_operand.vmem [shape: f32[2,8,128], index: 3, kind: output, shape index: {}]  }
   0x1   :  { %s374_s14 = smov 0  }
   0x2 LB: > { %s25_s15 = sadd.s32 1, %s343_s13  ;;  %p294_p0 = scmp.ge.s32.totalorder %s347_s14, 1  ;;  %s347_s14 = sphi %s374_s14, %s13_s14   ;;  %s343_s13 = sphi %s372_s13, %s411_s13   ;;  %s339_s12 = sphi %s370_s12, %s410_s12  }
   0x3   : > { %p27_p1 = scmp.ge.s32.totalorder %s25_s15, 2  ;;  %p155_p2 = scmp.lt.s32.totalorder %s347_s14, 3 }
   0x5   : > { %s413_s15 = smov (%p27_p1, %s25_s15), 0  ;;  %p156_p3 = pnand %p294_p0, %p155_p2 }
   0x6   : > { %p183_p4 = scmp.lt.s32.totalorder (!%p156_p3), %s339_s12, 1 }
   0x7   : > { %159 = sbr.rel (%p156_p3) target bundleno = 143 (0x8f), region = 32 }
   0xc   : > { %v198_v0 = vld [vmem:[%s407_s1] sm:$0xff]  ;;  %v349_v1 = vmov 0   ;;  %s415_s12 = smov (!%p183_p4, %s339_s12), 1 }
   0xd   : > { %324 = vset.pattern.permute.xlu0 %v349_v1  ;;  %v205_v2 = vld [vmem:[%s408_s2] sm:$0xff]  ;;  %s295_s20 = sshll.u32 %s415_s12, 3 }
   0xe   : > { %201 = vperm.xlu0 %324, %v198_v0   ;;  %s189_s23 = scalar_lea.vmem %s406_s0, %s295_s20  ;;  %s196_s26 = scalar_lea.vmem %s409_s3, %s295_s20 }
   0xf   : > { %v197_v4 = vld [vmem:[%s189_s23] sm:$0xff] }
  0x16   : > { %208 = vperm.xlu0 %324, %v205_v2  }
  0x80   : > { %v202_v3 = vpop.permute.xlu0 %201 }
  0x81   : > { %v204_v5 = vmul.f32 %v202_v3, %v197_v4 }
  0x88   : > { %v209_v6 = vpop.permute.xlu0 %208 }
  0x89   : > { %v211_v7 = vadd.f32 %v209_v6, %v204_v5 }
  0x8b   : > { %vm212_vm0 = vcmp.ge.f32.partialorder %v211_v7, 0.0  ;;  %v213_v8 = vmul.f32 0.01, %v211_v7 }
  0x8d   : > { %v214_v9 = vsel %vm212_vm0, %v211_v7, %v213_v8 }
  0x8e   : > { %215 = vst [vmem:[%s196_s26] sm:$0xff] %v214_v9 }
  0x8f PF: > { %s13_s14 = sadd.s32 1, %s347_s14   ;;  %s410_s12 = smov %s343_s13 }
  0x90   : > { %p10_p5 = scmp.ge.s32.totalorder %s13_s14, 4   ;;  %s411_s13 = smov %s413_s15 }
  0x92   :  { %12 = sbr.rel (!%p10_p5) target bundleno = 2 (0x2), region = 62 }

// kernel: conv1d_encoder_forward.10
= control target key start
LH: loop header
LB: loop body
LE: loop exit
PB: predicated region body
PF: predicated region fallthrough
CT: control target
= control target key end

     0   :  { %s527_s15 = smov 0   ;;  %s529_s16 = smov 0   ;;  %s579_s0 = inlined_call_operand.vmem [shape: f32[2,8,128], index: 0, kind: input, shape index: {}]   ;;  %s580_s1 = inlined_call_operand.vmem [shape: f32[16,8], index: 1, kind: input, shape index: {}]   ;;  %s581_s2 = inlined_call_operand.vmem [shape: f32[16,1], index: 2, kind: input, shape index: {}]   ;;  %s582_s3 = inlined_call_operand.vmem [shape: f32[2,16,128], index: 3, kind: output, shape index: {0}]   ;;  %s583_s4 = inlined_call_operand.vmem [shape: f32[2,16,2], index: 4, kind: output, shape index: {1}]  }
   0x1   :  { %s531_s17 = smov 0  }
   0x2 LB: > { %s27_s18 = sadd.s32 1, %s495_s16  ;;  %p438_p0 = scmp.ge.s32.totalorder %s499_s17, 1  ;;  %s499_s17 = sphi %s531_s17, %s15_s17   ;;  %s495_s16 = sphi %s529_s16, %s585_s16   ;;  %s491_s15 = sphi %s527_s15, %s584_s15  }
   0x3   : > { %p29_p1 = scmp.ge.s32.totalorder %s27_s18, 2  ;;  %p185_p2 = scmp.lt.s32.totalorder %s499_s17, 3 }
   0x5   : > { %s587_s18 = smov (%p29_p1, %s27_s18), 0  ;;  %p186_p3 = pnand %p438_p0, %p185_p2 }
   0x6   : > { %p222_p4 = scmp.lt.s32.totalorder (!%p186_p3), %s491_s15, 1 }
   0x7   : > { %189 = sbr.rel (%p186_p3) target bundleno = 274 (0x112), region = 32 }
   0xc   : > { %v247_v0 = vld [vmem:[%s581_s2] sm:$0xff]  ;;  %v501_v1 = vmov 0   ;;  %s589_s15 = smov (!%p222_p4, %s491_s15), 1  ;;  %vm259_vm0 = vcmask 64512   ;;  %v246_v3 = vld [vmem:[%s580_s1 + $0x8] sm:$0xff]  ;;  %v289_v7 = vlaneseq  ;;  %vm309_vm2 = vcmask 7168  }
   0xd   : > { %476 = vset.pattern.permute.xlu0 %v501_v1  ;;  %s439_s21 = sshll.u32 %s589_s15, 3  ;;  %v245_v2 = vld [vmem:[%s580_s1] sm:$0xff]  ;;  %v248_v5 = vld [vmem:[%s581_s2 + $0x8] sm:$0xff]  ;;  %s448_s5 = sshll.u32 %s589_s15, 4  ;;  %vm312_vm3 = vcmask 15360  }
   0xe   : > { %251 = vperm.xlu0 %476, %v247_v0   ;;  %s228_s24 = scalar_lea.vmem %s579_s0, %s439_s21  ;;  %v290_v8 = vand.u32 127, %v289_v7  ;;  %s236_s8 = scalar_lea.vmem %s582_s3, %s448_s5 }
   0xf   : > { %v244_v4 = vld [vmem:[%s228_s24] sm:$0xff]  ;;  %s242_s11 = scalar_lea.vmem %s583_s4, %s448_s5 }
  0x10   : > { %281 = vmatpush.msra.mxu0 %v244_v4  ;;  %450 = vmatpush.msra.mxu1 %v244_v4  ;;  %vm294_vm1 = vcmp.lt.s32.totalorder %v290_v8, 16 }
  0x11   : > { %444 = vmatmul.msk.f32.vlgmr.msra.gmra.mxu0 %vm259_vm0, %v245_v2  ;;  %445 = vmatmul.msk.f32.vlgmr.msra.gmra.mxu1 %vm259_vm0, %v246_v3 }
  0x16   : > { %256 = vperm.xlu0 %476, %v248_v5  }
  0x80   : > { %v252_v6 = vpop.permute.xlu0 %251 }
  0x88   : > { %v257_v9 = vpop.permute.xlu0 %256 }
  0x8e   : > { %v283_v10 = vpop.f32.mrf.mxu0  ;;  %v286_v11 = vpop.f32.mrf.mxu1 }
  0x8f   : > { %v284_v12 = vadd.f32 %v283_v10, %v252_v6  ;;  %v287_v13 = vadd.f32 %v286_v11, %v257_v9 }
  0x91   : > { %315 = vst [vmem:[%s236_s8] sm:$0xff] %v284_v12  ;;  %v297_v14 = vsel %vm294_vm1, %v284_v12, 0.0  ;;  %v298_v16 = vsel %vm294_vm1, %v287_v13, 0.0 }
  0x92   : > { %316 = vst [vmem:[%s236_s8 + $0x8] sm:$0xff] %v287_v13  ;;  %299 = vadd.xlane.f32.xlu1 %v297_v14  ;;  %v303_v15 = vmul.f32 %v297_v14, %v297_v14  ;;  %v304_v17 = vmul.f32 %v298_v16, %v298_v16 }
  0x94   : > { %305 = vadd.xlane.f32.xlu2 %v303_v15 }
  0x9a   : > { %301 = vadd.xlane.f32.xlu1 %v298_v16 }
  0x9c   : > { %307 = vadd.xlane.f32.xlu2 %v304_v17 }
 0x105   : > { %v300_v18 = vpop.xlane.xlu1 %299 }
 0x107   : > { %v306_v19 = vpop.xlane.xlu2 %305 }
 0x108   : > { %v310_v20 = vsel %vm309_vm2, %v300_v18, %v306_v19 }
 0x109   : > { %313 = vst.msk [vmem:[%s242_s11] sm:$0xff] %vm312_vm3, %v310_v20 }
 0x10d   : > { %v302_v21 = vpop.xlane.xlu1 %301 }
 0x10f   : > { %v308_v22 = vpop.xlane.xlu2 %307 }
 0x110   : > { %v311_v23 = vsel %vm309_vm2, %v302_v21, %v308_v22 }
 0x111   : > { %314 = vst.msk [vmem:[%s242_s11 + $0x8] sm:$0xff] %vm312_vm3, %v311_v23 }
 0x112 PF: > { %s15_s17 = sadd.s32 1, %s499_s17   ;;  %s584_s15 = smov %s495_s16 }
 0x113   : > { %p12_p5 = scmp.ge.s32.totalorder %s15_s17, 4   ;;  %s585_s16 = smov %s587_s18 }
 0x115   :  { %14 = sbr.rel (!%p12_p5) target bundleno = 2 (0x2), region = 74 }

// kernel: conv1d_encoder_forward.11
= control target key start
LH: loop header
LB: loop body
LE: loop exit
PB: predicated region body
PF: predicated region fallthrough
CT: control target
= control target key end

     0   :  { %9 = vsyncpa [#allocation3], 0  ;;  %s705_s0 = inlined_call_operand.vmem [shape: f32[2,16,128], index: 0, kind: input, shape index: {}]   ;;  %s706_s1 = inlined_call_operand.vmem [shape: f32[16,1], index: 1, kind: input, shape index: {}]   ;;  %s707_s2 = inlined_call_operand.vmem [shape: f32[16,1], index: 2, kind: input, shape index: {}]   ;;  %s708_s3 = inlined_call_operand.vmem [shape: f32[2,16,128], index: 3, kind: input, shape index: {}]   ;;  %s709_s4 = inlined_call_operand.hbm [shape: f32[2,16,128], index: 4, kind: output, shape index: {}]  }
   0x1   :  { %11 = vsyncpa [#allocation3 + $0x1], 0  ;;  %s593_s15 = smov 0   ;;  %s595_s16 = smov 0  }
   0x2   :  { %s597_s17 = smov 0   ;;  %s599_s18 = smov 0  }
   0x3   :  { %s601_s19 = smov 0   ;;  %s603_s20 = smov 0  }
   0x4 LB: > { %s407_s21 = sadd.s32 4294967295, %s563_s20   ;;  %s408_s22 = sadd.s32 4294967294, %s563_s20   ;;  %s563_s20 = sphi %s603_s20, %s17_s20   ;;  %s559_s19 = sphi %s601_s19, %s716_s19   ;;  %s555_s18 = sphi %s599_s18, %s715_s18   ;;  %s551_s17 = sphi %s597_s17, %s714_s17   ;;  %s547_s16 = sphi %s595_s16, %s713_s16   ;;  %s543_s15 = sphi %s593_s15, %s712_s15  }
   0x5   : > { %s29_s23 = sadd.s32 1, %s559_s19  ;;  %s136_s24 = sadd.s32 1, %s551_s17 }
   0x6   : > { %p31_p0 = scmp.ge.s32.totalorder %s29_s23, 2  ;;  %p146_p1 = scmp.ne.s32.totalorder %s551_s17, %s547_s16 }
   0x7   : > { %p147_p2 = scmp.eq.s32.totalorder %s407_s21, 1  ;;  %p152_p3 = scmp.ne.s32.totalorder %s547_s16, %s543_s15 }
   0x8   : > { %s718_s23 = smov (%p31_p0, %s29_s23), 0  ;;  %p153_p5 = scmp.eq.s32.totalorder %s408_s22, 1 }
   0x9   : > { %p633_p4 = por %p147_p2, %p146_p1  ;;  %s131_s26 = ssub.s32 %s559_s19, %s718_s23 }
   0xa   : > { %p411_p6 = scmp.ge.s32.totalorder %s563_s20, 1  ;;  %p134_p7 = scmp.eq.s32.totalorder %s131_s26, 0 }
   0xb   : > { %p640_p8 = por %p153_p5, %p152_p3  ;;  %p199_p9 = scmp.lt.s32.totalorder %s563_s20, 3 }
   0xc   : > { %s646_s28 = scalar_select %p134_p7, %s551_s17, %s136_s24  }
   0xd   : > { %p200_p10 = pnand %p411_p6, %p199_p9 }
   0xe   : > { %p236_p11 = scmp.lt.s32.totalorder (!%p200_p10), %s555_s18, 1  ;;  %s233_s22 = sand.u32 (!%p200_p10), 1, %s547_s16  }
   0xf   : > { %203 = sbr.rel (%p200_p10) target bundleno = 158 (0x9e), region = 36  ;;  %s412_s30 = sshll.u32 (!%p200_p10), %s233_s22, 4 }
  0x10   : > { %s424_s5 = sshll.u32 (!%p200_p10), %s555_s18, 4  ;;  %s235_s9 = scalar_lea.vmem (!%p200_p10), [#allocation2], %s412_s30 }
  0x11   : > { %s307_s8 = scalar_lea.hbm (!%p200_p10), %s709_s4, %s424_s5  ;;  %s308_s10 = sshll.u32 (!%p200_p10), %s235_s9, 4  ;;  %s309_s10 = int_to_ptr.vmem [resolvable:$true] %s308_s10 }
  0x12   : > { %s505_s24 = scalar_lea.hbm (!%p200_p10), %s709_s4, 32 }
  0x14   : > { %v268_v0 = vld [vmem:[%s707_s2] sm:$0xff]  ;;  %v565_v2 = vmov 0   ;;  %v269_v3 = vld [vmem:[%s707_s2 + $0x8] sm:$0xff]  ;;  %s237_s11 = scalar_select %p236_p11, %s555_s18, 1 }
  0x15   : > { %v254_v1 = vld [vmem:[%s706_s1] sm:$0xff]  ;;  %484 = vset.pattern.permute.xlu1 %v565_v2  ;;  %483 = vset.pattern.permute.xlu0 %v565_v2  ;;  %v255_v4 = vld [vmem:[%s706_s1 + $0x8] sm:$0xff]  ;;  %s295_s18 = scalar_lea.sflag [#allocation3], %s233_s22 }
  0x16   : > { %272 = vperm.xlu1 %484, %v268_v0   ;;  %258 = vperm.xlu0 %483, %v254_v1   ;;  %s422_s12 = sshll.u32 %s237_s11, 4  ;;  %s310_s11 = sshll.u32 %s307_s8, 4  ;;  %s311_s11 = int_to_ptr.hbm [resolvable:$true] %s310_s11 }
  0x17   : > { %s243_s21 = scalar_lea.vmem %s705_s0, %s422_s12  ;;  %s251_s29 = scalar_lea.vmem %s708_s3, %s422_s12 }
  0x18   : > { %v252_v5 = vld [vmem:[%s243_s21] sm:$0xff]  ;;  %v253_v12 = vld [vmem:[%s243_s21 + $0x8] sm:$0xff]  ;;  %s499_s12 = sshra.s32 %s311_s11, 4  ;;  %s500_s12 = int_to_ptr.hbm [resolvable:$true] %s499_s12 }
  0x19   : > { %v288_v11 = vld [vmem:[%s251_s29] sm:$0xff]  ;;  %v289_v19 = vld [vmem:[%s251_s29 + $0x8] sm:$0xff]  ;;  %s501_s13 = scalar_lea.hbm %s500_s12, 16  ;;  %p506_p1 = scmp.lt.s32.totalorder %s500_s12, %s709_s4 }
  0x1a   : > { %p502_p12 = scmp.ne.s32.totalorder %s500_s12, %s501_s13  ;;  %p507_p2 = scmp.lt.s32.totalorder %s505_s24, %s501_s13 }
  0x1c   : > { %p503_p13 = pnand %p502_p12, %p633_p4  ;;  %p508_p3 = por %p507_p2, %p506_p1 }
  0x1e   : > { %277 = vperm.xlu1 %484, %v269_v3   ;;  %263 = vperm.xlu0 %483, %v255_v4   ;;  %p504_p0 = pneg %p503_p13 }
  0x20   : > { %p509_p5 = pnand %p508_p3, %p504_p0 }
  0x88   : > { %v273_v6 = vpop.permute.xlu1 %272  ;;  %v259_v7 = vpop.permute.xlu0 %258 }
  0x89   : > { %v266_v8 = vmul.f32 %v259_v7, %v252_v5 }
  0x8b   : > { %v280_v9 = vadd.f32 %v273_v6, %v266_v8 }
  0x8d   : > { %vm282_vm0 = vcmp.ge.f32.partialorder %v280_v9, 0.0  ;;  %v284_v10 = vmul.f32 0.01, %v280_v9 }
  0x8f   : > { %v286_v13 = vsel %vm282_vm0, %v280_v9, %v284_v10 }
  0x90   : > { %v290_v14 = vadd.f32 %v288_v11, %v286_v13  ;;  %v264_v15 = vpop.permute.xlu0 %263  ;;  %v278_v17 = vpop.permute.xlu1 %277 }
  0x91   : > { %v267_v16 = vmul.f32 %v264_v15, %v253_v12 }
  0x92   : > { %292 = vst [vmem:[%s235_s9] sm:$0xff] %v290_v14 }
  0x93   : > { %v281_v18 = vadd.f32 %v278_v17, %v267_v16 }
  0x95   : > { %vm283_vm1 = vcmp.ge.f32.partialorder %v281_v18, 0.0  ;;  %v285_v20 = vmul.f32 0.01, %v281_v18 }
  0x97   : > { %v287_v21 = vsel %vm283_vm1, %v281_v18, %v285_v20 }
  0x98   : > { %v291_v22 = vadd.f32 %v289_v19, %v287_v21 }
  0x9a   : > { %293 = vst [vmem:[%s235_s9 + $0x8] sm:$0xff] %v291_v22 }
  0x9b   : > { %512 = shalt.err (!%p509_p5)
}
  0x9c   : > { %s566_s22 = smov 128   ;;  %s567_s30 = smov 8  }
  0x9d   : > { %425 = dma.vmem_to_hbm [thread:$0]  (%p633_p4), %s309_s10, 256, %s311_s11, %s295_s18, %s566_s22, %s566_s22, %s567_s30  }
  0x9e PF: > { %p431_p6 = scmp.ge.s32.totalorder %s563_s20, 2  ;;  %s325_s5 = sand.u32 1, %s543_s15  }
  0x9f   : > { %s326_s6 = scalar_lea.sflag [#allocation3], %s325_s5 }
  0xa0   : > { %p428_p7 = pnand %p431_p6, %p640_p8 }
  0xa2   : > { %p429_p9 = pneg %p428_p7 }
  0xa4   : > { %538 = dma.done.wait (%p429_p9), %s326_s6, 256  }
  0xa5   : > { %540 = vsyncadd (%p429_p9), %s326_s6, 4294967040  ;;  %s17_s20 = sadd.s32 1, %s563_s20   ;;  %s712_s15 = smov %s547_s16 }
  0xa6   : > { %p14_p10 = scmp.ge.s32.totalorder %s17_s20, 4   ;;  %s713_s16 = smov %s551_s17 }
  0xa7   : > { %s714_s17 = smov %s646_s28  ;;  %s715_s18 = smov %s559_s19 }
  0xa8   : > { %s716_s19 = smov %s718_s23  ;;  %16 = sbr.rel (!%p14_p10) target bundleno = 4 (0x4), region = 74 }
  0xad   :  { %332 = vsyncpa [#allocation3], 1 }
  0xae   :  { %334 = vsyncpa [#allocation3 + $0x1], 1 }

</bundles_post_ra>
